<compile_context>
chip_gen: v7x
topology: tpu7x:2x2x1
jax: 0.10.0
libtpu: 0.0.40
codegen_flags: <defaults>
</compile_context>

<pallas_src>
import jax
import jax.numpy as jnp
import numpy as np
from jax import lax
from jax.experimental import pallas as pl
from jax.experimental.pallas import tpu as pltpu


def _vmem_capacity_bytes():
    """Per-core VMEM capacity; conservative (v7x = 64 MiB) if unknown."""
    try:
        info = pltpu.get_tpu_info()
        cap = getattr(info, "vmem_capacity_bytes", None)
        if cap:
            return int(cap)
    except Exception:
        pass
    return 64 << 20


def _pick_tiles(rows, cols, y_scale, x_scale, itemsize, use_l, budget):
    """Pick (rb, tb): big blocks to amortize the ~0.35us/step overhead and make
    the output DMA lane-dense, bounded by a generation-aware VMEM budget."""
    tb = cols if cols <= 128 else 128          # lanes: 128 (or full if small)
    rb_cap = 128 if use_l else 1024            # cap L-matmul reduction depth
    rb = rows if rows <= rb_cap else rb_cap

    def ws(rb_):
        in_t = rb_ * tb * itemsize
        out_t = rb_ * y_scale * tb * x_scale * itemsize
        r_t = tb * tb * x_scale * itemsize if x_scale > 1 else 0
        l_t = rb_ * y_scale * rb_ * itemsize if use_l else 0
        return 2 * (in_t + out_t) + 2 * (r_t + l_t)   # double buffered

    while ws(rb) > budget and rb > 8:
        rb = max(8, ((rb // 2) // 8) * 8)

    # Megacore (v7x has 2 TensorCores): ensure at least one parallel grid axis
    # has >= 2 blocks, otherwise one core sits idle.
    if pl.cdiv(rows, rb) < 2 and pl.cdiv(cols, tb) < 2 and rows >= 16:
        rb = max(8, ((-(-rows // 2) + 7) // 8) * 8)

    return rb, tb, ws(rb)


def _make_kernel(*, y_scale, x_scale, rows, cols, rb, tb, row_mode,
                 use_l, use_r, precision):
    def kernel(*refs):
        pos = 0
        l_ref = None
        if use_l:
            l_ref = refs[pos]
            pos += 1
        x_ref = refs[pos]
        pos += 1
        r_ref = None
        if use_r:
            r_ref = refs[pos]
            pos += 1
        o_ref = refs[pos]

        x = x_ref[...]                                   # (rb, tb) input tile

        # Padded HBM garbage only matters where it can reach a matmul
        # reduction (0 * NaN == NaN).  Plain stores of garbage rows/cols land
        # in the clipped region of edge output blocks and are discarded, so
        # the row mask is only needed on the L-matmul fallback.  The column
        # mask only changes values on the last (ragged) block; its ~3 VPU
        # passes over the small *input* tile are negligible vs the output DMA.
        if use_r and cols % tb != 0:
            j = pl.program_id(1)
            cid = lax.broadcasted_iota(jnp.int32, x.shape, 1)
            x = jnp.where(cid < cols - j * tb, x, 0)
        if use_l and rows % rb != 0:
            i = pl.program_id(0)
            rid = lax.broadcasted_iota(jnp.int32, x.shape, 0)
            x = jnp.where(rid < rows - i * rb, x, 0)

        if use_l:
            # Last-resort row replication on the MXU (rb capped at 128).
            x = jnp.dot(l_ref[...], x, preferred_element_type=o_ref.dtype,
                        precision=precision)
        if use_r:
            # Column (time) replication: (.., tb) @ (tb, tb*xs).  Exact: R is
            # 0/1 (exact in bf16) and each output sums a single nonzero term.
            t = jnp.dot(x, r_ref[...], preferred_element_type=o_ref.dtype,
                        precision=precision)
        else:
            t = x
        t = t.astype(o_ref.dtype)

        if use_l or y_scale == 1:
            o_ref[...] = t
        elif row_mode == "strided":
            # Row replication at store time: ys sublane-strided stores of the
            # same (rb, tb*xs) tile -- no MXU work, no O(rb) reduction.
            for r in range(y_scale):
                o_ref[pl.ds(r, rb, stride=y_scale), :] = t
        else:  # "repeat": sublane broadcast + reshape fallback
            o_ref[...] = jnp.repeat(t, y_scale, axis=0)

    return kernel


def _stretch_rows(x2, y_scale, x_scale, row_mode):
    """2-D core: out2[v, w] = x2[v // y_scale, w // x_scale]."""
    rows, cols = x2.shape
    dt = x2.dtype
    itemsize = jnp.dtype(dt).itemsize
    use_r = x_scale > 1
    use_l = (row_mode == "matmul") and y_scale > 1

    cap = _vmem_capacity_bytes()
    # ~19 MiB on v7x (64 MiB VMEM), ~38 MiB on v5e/v6e (128 MiB).
    budget = min(40 << 20, max(8 << 20, int(cap * 0.3)))
    rb, tb, ws = _pick_tiles(rows, cols, y_scale, x_scale, itemsize, use_l,
                             budget)
    grid = (pl.cdiv(rows, rb), pl.cdiv(cols, tb))

    # Pin matmul precision: f32 exactness relies on the multi-pass MXU path
    # (HIGHEST); bf16 inputs are exact on the native single-pass path.
    precision = (lax.Precision.HIGHEST if dt == jnp.float32
                 else lax.Precision.DEFAULT)

    operands, in_specs = [], []
    if use_l:
        L = (jnp.arange(rb * y_scale)[:, None] // y_scale
             == jnp.arange(rb)[None, :]).astype(dt)
        operands.append(L)
        in_specs.append(pl.BlockSpec((rb * y_scale, rb), lambda i, j: (0, 0)))
    operands.append(x2)
    in_specs.append(pl.BlockSpec((rb, tb), lambda i, j: (i, j)))
    if use_r:
        R = (jnp.arange(tb)[:, None]
             == jnp.arange(tb * x_scale)[None, :] // x_scale).astype(dt)
        operands.append(R)
        in_specs.append(pl.BlockSpec((tb, tb * x_scale), lambda i, j: (0, 0)))

    out_spec = pl.BlockSpec((rb * y_scale, tb * x_scale), lambda i, j: (i, j))

    flops_tile = 0
    if use_r:
        flops_tile += 2 * (rb * (y_scale if use_l else 1)) * (tb * x_scale) * tb
    if use_l:
        flops_tile += 2 * (rb * y_scale) * rb * tb
    flops = flops_tile * grid[0] * grid[1]
    bytes_accessed = (rows * cols + rows * y_scale * cols * x_scale) * itemsize
    if use_r:
        bytes_accessed += tb * tb * x_scale * itemsize
    if use_l:
        bytes_accessed += rb * y_scale * rb * itemsize

    kernel = _make_kernel(y_scale=y_scale, x_scale=x_scale, rows=rows,
                          cols=cols, rb=rb, tb=tb, row_mode=row_mode,
                          use_l=use_l, use_r=use_r, precision=precision)

    # Derive the scoped-VMEM request from the actual working set (+headroom),
    # never asking for more than ~55% of physical VMEM (v7x-safe).
    vmem_limit = int(min(cap * 0.55, max(ws * 1.25 + (2 << 20), 8 << 20)))

    return pl.pallas_call(
        kernel,
        out_shape=jax.ShapeDtypeStruct((rows * y_scale, cols * x_scale), dt),
        grid_spec=pltpu.PrefetchScalarGridSpec(
            num_scalar_prefetch=0, grid=grid,
            in_specs=in_specs, out_specs=out_spec),
        compiler_params=pltpu.CompilerParams(
            dimension_semantics=("parallel", "parallel"),
            vmem_limit_bytes=vmem_limit),
        cost_estimate=pl.CostEstimate(flops=int(flops), transcendentals=0,
                                      bytes_accessed=int(bytes_accessed)),
    )(*operands)


_ROW_MODE_CACHE = {}


def _select_row_mode(y_scale, x_scale, dtype):
    """Pick the row-replication strategy for this (ys, xs, dtype).

    Preference order (per perf review): sublane-strided stores, then sublane
    jnp.repeat, then (last resort) the 0/1 L matmul.  A tiny on-device probe
    checks both that the mode lowers on the current Mosaic build and that it
    is bit exact before it is used at full size."""
    if y_scale == 1:
        return "strided"                      # no row replication needed
    key = (int(y_scale), int(x_scale), jnp.dtype(dtype).name)
    if key in _ROW_MODE_CACHE:
        return _ROW_MODE_CACHE[key]

    rows, cols = 16, 16
    vals = (np.arange(rows * cols, dtype=np.float32).reshape(rows, cols)
            % 13.0) - 6.0                     # exactly representable in bf16
    xp = jnp.asarray(vals, dtype=dtype)
    ref = np.repeat(np.repeat(np.asarray(xp.astype(jnp.float32)),
                              y_scale, axis=0), x_scale, axis=1)

    chosen = "matmul"
    for cand in ("strided", "repeat", "matmul"):
        try:
            out = _stretch_rows(xp, y_scale, x_scale, cand)
            out = np.asarray(jax.block_until_ready(out).astype(jnp.float32))
            if out.shape == ref.shape and np.array_equal(out, ref):
                chosen = cand
                break
        except Exception:
            continue
    _ROW_MODE_CACHE[key] = chosen
    return chosen


def stretch2d(x, x_scale, y_scale, mode="nearest"):
    """Pallas equivalent of Stretch2d(x_scale, y_scale, mode='nearest')(x)."""
    assert mode == "nearest", "only nearest mode is implemented"
    # TODO(synk): bilinear / other F.interpolate modes are not implemented.
    assert x_scale >= 1 and y_scale >= 1
    B, C, F, T = x.shape
    if x_scale == 1 and y_scale == 1:
        return x
    assert jnp.issubdtype(x.dtype, jnp.floating), "float inputs only"
    # TODO(synk): integer dtypes would need a non-MXU column replication.

    rows = B * C * F                    # out2[v, w] = in2[v // ys, w // xs]
    x2 = x.reshape(rows, T)             # leading-dim merge: free
    row_mode = _select_row_mode(y_scale, x_scale, x.dtype)
    out2 = _stretch_rows(x2, y_scale, x_scale, row_mode)
    return out2.reshape(B, C, F * y_scale, T * x_scale)   # free split


def _ref_stretch(x_np, x_scale, y_scale):
    return np.repeat(np.repeat(x_np, y_scale, axis=2), x_scale, axis=3)


if __name__ == "__main__":
    # Case 1: module-spec shape (B, C, F, T) = (2, 4, 16, 16), f32.
    B, C, F, T = 2, 4, 16, 16
    x_scale, y_scale = 3, 2
    x = jax.random.normal(jax.random.PRNGKey(0), (B, C, F, T),
                          dtype=jnp.float32)
    out = jax.block_until_ready(
        stretch2d(x, x_scale=x_scale, y_scale=y_scale, mode="nearest"))
    assert out.shape == (B, C, F * y_scale, T * x_scale), out.shape
    assert out.dtype == x.dtype, out.dtype
    np.testing.assert_array_equal(
        np.asarray(out), _ref_stretch(np.asarray(x), x_scale, y_scale))

    # Case 2: tiled / partial-block path (rows > one block, T % 128 != 0) in
    # bf16 — exercises edge-column masking, ragged blocks and lane-dense tiles.
    B2, C2, F2, T2 = 2, 2, 80, 300
    xs2, ys2 = 2, 3
    xb = jax.random.normal(jax.random.PRNGKey(1), (B2, C2, F2, T2),
                           dtype=jnp.bfloat16)
    outb = jax.block_until_ready(
        stretch2d(xb, x_scale=xs2, y_scale=ys2, mode="nearest"))
    assert outb.shape == (B2, C2, F2 * ys2, T2 * xs2), outb.shape
    assert outb.dtype == xb.dtype, outb.dtype
    ref_b = _ref_stretch(np.asarray(xb.astype(jnp.float32)), xs2, ys2)
    np.testing.assert_array_equal(np.asarray(outb.astype(jnp.float32)), ref_b)

    print("KERNEL_OK")
</pallas_src>

<mosaic_0001>
module attributes {stable_mosaic.version = 11 : i64} {
  func.func @kernel(%arg0: i32, %arg1: i32, %arg2: memref<8x16xf32, #tpu.memory_space<vmem>>, %arg3: memref<16x48xf32, #tpu.memory_space<vmem>>, %arg4: memref<16x48xf32, #tpu.memory_space<vmem>>) attributes {dimension_semantics = [#tpu.dimension_semantics<parallel>, #tpu.dimension_semantics<parallel>], iteration_bounds = array<i64: 2, 1>, scalar_prefetch = 0 : i64, scratch_operands = 0 : i64, tpu.core_type = #tpu.core_type<tc>, window_params = [{transform_indices = @transform_0, window_bounds = array<i64: 8, 16>}, {pipeline_mode = #tpu.pipeline_mode<synchronous>, transform_indices = @transform_1, window_bounds = array<i64: 16, 48>}, {transform_indices = @transform_2, window_bounds = array<i64: 16, 48>}]} {
    %c0 = arith.constant 0 : index
    %c0_0 = arith.constant 0 : index
    %0 = vector.load %arg2[%c0, %c0_0] : memref<8x16xf32, #tpu.memory_space<vmem>>, vector<8x16xf32>
    %c0_1 = arith.constant 0 : index
    %c0_2 = arith.constant 0 : index
    %1 = vector.load %arg3[%c0_1, %c0_2] : memref<16x48xf32, #tpu.memory_space<vmem>>, vector<16x48xf32>
    %cst = arith.constant dense<0.000000e+00> : vector<8x48xf32>
    %2 = tpu.matmul %0, %1, %cst {dimension_numbers = #tpu.dot_dimension_numbers<[1], [0], [0], [1], [0, 0, 1, 1], [], []>, precision = #tpu.contract_precision<fp32>} : vector<8x16xf32>, vector<16x48xf32>, vector<8x48xf32> -> vector<8x48xf32>
    %c0_3 = arith.constant 0 : index
    %c0_4 = arith.constant 0 : index
    %3 = tpu.strided_load %arg4[%c0_3, %c0_4] {strides = array<i32: 2, 1>} : memref<16x48xf32, #tpu.memory_space<vmem>>, vector<8x48xf32>
    tpu.strided_store %arg4[%c0_3, %c0_4], %2 {strides = array<i32: 2, 1>} : memref<16x48xf32, #tpu.memory_space<vmem>>, vector<8x48xf32>
    %c1 = arith.constant 1 : index
    %c0_5 = arith.constant 0 : index
    %4 = tpu.strided_load %arg4[%c1, %c0_5] {strides = array<i32: 2, 1>} : memref<16x48xf32, #tpu.memory_space<vmem>>, vector<8x48xf32>
    tpu.strided_store %arg4[%c1, %c0_5], %2 {strides = array<i32: 2, 1>} : memref<16x48xf32, #tpu.memory_space<vmem>>, vector<8x48xf32>
    return
  }
  func.func @transform_0(%arg0: i32, %arg1: i32) -> (i32, i32) {
    %c0_i32 = arith.constant 0 : i32
    return %arg0, %arg1 : i32, i32
  }
  func.func @transform_1(%arg0: i32, %arg1: i32) -> (i32, i32) {
    %c0_i32 = arith.constant 0 : i32
    %c0_i32_0 = arith.constant 0 : i32
    %c0_i32_1 = arith.constant 0 : i32
    return %c0_i32, %c0_i32_0 : i32, i32
  }
  func.func @transform_2(%arg0: i32, %arg1: i32) -> (i32, i32) {
    %c0_i32 = arith.constant 0 : i32
    return %arg0, %arg1 : i32, i32
  }
}

module attributes {stable_mosaic.version = 11 : i64} {
  func.func @kernel(%arg0: i32, %arg1: i32, %arg2: memref<8x16xf32, #tpu.memory_space<vmem>>, %arg3: memref<16x48xf32, #tpu.memory_space<vmem>>, %arg4: memref<16x48xf32, #tpu.memory_space<vmem>>) attributes {dimension_semantics = [#tpu.dimension_semantics<parallel>, #tpu.dimension_semantics<parallel>], iteration_bounds = array<i64: 2, 1>, scalar_prefetch = 0 : i64, scratch_operands = 0 : i64, tpu.core_type = #tpu.core_type<tc>, window_params = [{transform_indices = @transform_0, window_bounds = array<i64: 8, 16>}, {pipeline_mode = #tpu.pipeline_mode<synchronous>, transform_indices = @transform_1, window_bounds = array<i64: 16, 48>}, {transform_indices = @transform_2, window_bounds = array<i64: 16, 48>}]} {
    %c0 = arith.constant 0 : index
    %c0_0 = arith.constant 0 : index
    %0 = vector.load %arg2[%c0, %c0_0] : memref<8x16xf32, #tpu.memory_space<vmem>>, vector<8x16xf32>
    %c0_1 = arith.constant 0 : index
    %c0_2 = arith.constant 0 : index
    %1 = vector.load %arg3[%c0_1, %c0_2] : memref<16x48xf32, #tpu.memory_space<vmem>>, vector<16x48xf32>
    %cst = arith.constant dense<0.000000e+00> : vector<8x48xf32>
    %2 = tpu.matmul %0, %1, %cst {dimension_numbers = #tpu.dot_dimension_numbers<[1], [0], [0], [1], [0, 0, 1, 1], [], []>, precision = #tpu.contract_precision<fp32>} : vector<8x16xf32>, vector<16x48xf32>, vector<8x48xf32> -> vector<8x48xf32>
    %3 = vector.shape_cast %2 : vector<8x48xf32> to vector<8x1x48xf32>
    %4 = vector.broadcast %3 : vector<8x1x48xf32> to vector<8x2x48xf32>
    %5 = vector.shape_cast %4 : vector<8x2x48xf32> to vector<16x48xf32>
    %c0_3 = arith.constant 0 : index
    %c0_4 = arith.constant 0 : index
    %6 = vector.load %arg4[%c0_3, %c0_4] : memref<16x48xf32, #tpu.memory_space<vmem>>, vector<16x48xf32>
    tpu.vector_store %arg4[%c0_3, %c0_4], %5 {strides = array<i32>} : memref<16x48xf32, #tpu.memory_space<vmem>>, vector<16x48xf32>,
    return
  }
  func.func @transform_0(%arg0: i32, %arg1: i32) -> (i32, i32) {
    %c0_i32 = arith.constant 0 : i32
    return %arg0, %arg1 : i32, i32
  }
  func.func @transform_1(%arg0: i32, %arg1: i32) -> (i32, i32) {
    %c0_i32 = arith.constant 0 : i32
    %c0_i32_0 = arith.constant 0 : i32
    %c0_i32_1 = arith.constant 0 : i32
    return %c0_i32, %c0_i32_0 : i32, i32
  }
  func.func @transform_2(%arg0: i32, %arg1: i32) -> (i32, i32) {
    %c0_i32 = arith.constant 0 : i32
    return %arg0, %arg1 : i32, i32
  }
}

module attributes {stable_mosaic.version = 11 : i64} {
  func.func @kernel(%arg0: i32, %arg1: i32, %arg2: memref<16x8xf32, #tpu.memory_space<vmem>>, %arg3: memref<8x16xf32, #tpu.memory_space<vmem>>, %arg4: memref<16x48xf32, #tpu.memory_space<vmem>>, %arg5: memref<16x48xf32, #tpu.memory_space<vmem>>) attributes {dimension_semantics = [#tpu.dimension_semantics<parallel>, #tpu.dimension_semantics<parallel>], iteration_bounds = array<i64: 2, 1>, scalar_prefetch = 0 : i64, scratch_operands = 0 : i64, tpu.core_type = #tpu.core_type<tc>, window_params = [{pipeline_mode = #tpu.pipeline_mode<synchronous>, transform_indices = @transform_0, window_bounds = array<i64: 16, 8>}, {transform_indices = @transform_1, window_bounds = array<i64: 8, 16>}, {pipeline_mode = #tpu.pipeline_mode<synchronous>, transform_indices = @transform_2, window_bounds = array<i64: 16, 48>}, {transform_indices = @transform_3, window_bounds = array<i64: 16, 48>}]} {
    %c0 = arith.constant 0 : index
    %c0_0 = arith.constant 0 : index
    %0 = vector.load %arg3[%c0, %c0_0] : memref<8x16xf32, #tpu.memory_space<vmem>>, vector<8x16xf32>
    %c0_1 = arith.constant 0 : index
    %c0_2 = arith.constant 0 : index
    %1 = vector.load %arg2[%c0_1, %c0_2] : memref<16x8xf32, #tpu.memory_space<vmem>>, vector<16x8xf32>
    %cst = arith.constant dense<0.000000e+00> : vector<16x16xf32>
    %2 = tpu.matmul %1, %0, %cst {dimension_numbers = #tpu.dot_dimension_numbers<[1], [0], [0], [1], [0, 0, 1, 1], [], []>, precision = #tpu.contract_precision<fp32>} : vector<16x8xf32>, vector<8x16xf32>, vector<16x16xf32> -> vector<16x16xf32>
    %c0_3 = arith.constant 0 : index
    %c0_4 = arith.constant 0 : index
    %3 = vector.load %arg4[%c0_3, %c0_4] : memref<16x48xf32, #tpu.memory_space<vmem>>, vector<16x48xf32>
    %cst_5 = arith.constant dense<0.000000e+00> : vector<16x48xf32>
    %4 = tpu.matmul %2, %3, %cst_5 {dimension_numbers = #tpu.dot_dimension_numbers<[1], [0], [0], [1], [0, 0, 1, 1], [], []>, precision = #tpu.contract_precision<fp32>} : vector<16x16xf32>, vector<16x48xf32>, vector<16x48xf32> -> vector<16x48xf32>
    %c0_6 = arith.constant 0 : index
    %c0_7 = arith.constant 0 : index
    %5 = vector.load %arg5[%c0_6, %c0_7] : memref<16x48xf32, #tpu.memory_space<vmem>>, vector<16x48xf32>
    tpu.vector_store %arg5[%c0_6, %c0_7], %4 {strides = array<i32>} : memref<16x48xf32, #tpu.memory_space<vmem>>, vector<16x48xf32>,
    return
  }
  func.func @transform_0(%arg0: i32, %arg1: i32) -> (i32, i32) {
    %c0_i32 = arith.constant 0 : i32
    %c0_i32_0 = arith.constant 0 : i32
    %c0_i32_1 = arith.constant 0 : i32
    return %c0_i32, %c0_i32_0 : i32, i32
  }
  func.func @transform_1(%arg0: i32, %arg1: i32) -> (i32, i32) {
    %c0_i32 = arith.constant 0 : i32
    return %arg0, %arg1 : i32, i32
  }
  func.func @transform_2(%arg0: i32, %arg1: i32) -> (i32, i32) {
    %c0_i32 = arith.constant 0 : i32
    %c0_i32_0 = arith.constant 0 : i32
    %c0_i32_1 = arith.constant 0 : i32
    return %c0_i32, %c0_i32_0 : i32, i32
  }
  func.func @transform_3(%arg0: i32, %arg1: i32) -> (i32, i32) {
    %c0_i32 = arith.constant 0 : i32
    return %arg0, %arg1 : i32, i32
  }
}

module attributes {stable_mosaic.version = 11 : i64} {
  func.func @kernel(%arg0: i32, %arg1: i32, %arg2: memref<128x64xf32, #tpu.memory_space<vmem>>, %arg3: memref<64x16xf32, #tpu.memory_space<vmem>>, %arg4: memref<16x48xf32, #tpu.memory_space<vmem>>, %arg5: memref<128x48xf32, #tpu.memory_space<vmem>>) attributes {dimension_semantics = [#tpu.dimension_semantics<parallel>, #tpu.dimension_semantics<parallel>], iteration_bounds = array<i64: 2, 1>, scalar_prefetch = 0 : i64, scratch_operands = 0 : i64, tpu.core_type = #tpu.core_type<tc>, window_params = [{pipeline_mode = #tpu.pipeline_mode<synchronous>, transform_indices = @transform_0, window_bounds = array<i64: 128, 64>}, {transform_indices = @transform_1, window_bounds = array<i64: 64, 16>}, {pipeline_mode = #tpu.pipeline_mode<synchronous>, transform_indices = @transform_2, window_bounds = array<i64: 16, 48>}, {transform_indices = @transform_3, window_bounds = array<i64: 128, 48>}]} {
    %c0 = arith.constant 0 : index
    %c0_0 = arith.constant 0 : index
    %0 = vector.load %arg3[%c0, %c0_0] : memref<64x16xf32, #tpu.memory_space<vmem>>, vector<64x16xf32>
    %c0_1 = arith.constant 0 : index
    %c0_2 = arith.constant 0 : index
    %1 = vector.load %arg2[%c0_1, %c0_2] : memref<128x64xf32, #tpu.memory_space<vmem>>, vector<128x64xf32>
    %cst = arith.constant dense<0.000000e+00> : vector<128x16xf32>
    %2 = tpu.matmul %1, %0, %cst {dimension_numbers = #tpu.dot_dimension_numbers<[1], [0], [0], [1], [0, 0, 1, 1], [], []>, precision = #tpu.contract_precision<fp32>} : vector<128x64xf32>, vector<64x16xf32>, vector<128x16xf32> -> vector<128x16xf32>
    %c0_3 = arith.constant 0 : index
    %c0_4 = arith.constant 0 : index
    %3 = vector.load %arg4[%c0_3, %c0_4] : memref<16x48xf32, #tpu.memory_space<vmem>>, vector<16x48xf32>
    %cst_5 = arith.constant dense<0.000000e+00> : vector<128x48xf32>
    %4 = tpu.matmul %2, %3, %cst_5 {dimension_numbers = #tpu.dot_dimension_numbers<[1], [0], [0], [1], [0, 0, 1, 1], [], []>, precision = #tpu.contract_precision<fp32>} : vector<128x16xf32>, vector<16x48xf32>, vector<128x48xf32> -> vector<128x48xf32>
    %c0_6 = arith.constant 0 : index
    %c0_7 = arith.constant 0 : index
    %5 = vector.load %arg5[%c0_6, %c0_7] : memref<128x48xf32, #tpu.memory_space<vmem>>, vector<128x48xf32>
    tpu.vector_store %arg5[%c0_6, %c0_7], %4 {strides = array<i32>} : memref<128x48xf32, #tpu.memory_space<vmem>>, vector<128x48xf32>,
    return
  }
  func.func @transform_0(%arg0: i32, %arg1: i32) -> (i32, i32) {
    %c0_i32 = arith.constant 0 : i32
    %c0_i32_0 = arith.constant 0 : i32
    %c0_i32_1 = arith.constant 0 : i32
    return %c0_i32, %c0_i32_0 : i32, i32
  }
  func.func @transform_1(%arg0: i32, %arg1: i32) -> (i32, i32) {
    %c0_i32 = arith.constant 0 : i32
    return %arg0, %arg1 : i32, i32
  }
  func.func @transform_2(%arg0: i32, %arg1: i32) -> (i32, i32) {
    %c0_i32 = arith.constant 0 : i32
    %c0_i32_0 = arith.constant 0 : i32
    %c0_i32_1 = arith.constant 0 : i32
    return %c0_i32, %c0_i32_0 : i32, i32
  }
  func.func @transform_3(%arg0: i32, %arg1: i32) -> (i32, i32) {
    %c0_i32 = arith.constant 0 : i32
    return %arg0, %arg1 : i32, i32
  }
}

</mosaic_0001>

<bundles_post_ra>
// kernel: tpu_custom_call.1
= control target key start
LH: loop header
LB: loop body
LE: loop exit
PB: predicated region body
PF: predicated region fallthrough
CT: control target
= control target key end

     0   :  { %7 = vsyncpa [#allocation3], 0  ;;  %s1349_s0 = inlined_call_operand.hbm [shape: f32[16,16], index: 0, kind: input, shape index: {}]   ;;  %s1350_s1 = inlined_call_operand.hbm [shape: f32[16,48], index: 1, kind: input, shape index: {}]   ;;  %s1351_s2 = inlined_call_operand.hbm [shape: f32[32,48], index: 2, kind: output, shape index: {}]  }
   0x1   :  { %9 = vsyncpa [#allocation3 + $0x1], 0 }
   0x2   :  { %10 = vsyncpa [#allocation6], 0 }
   0x3   :  { %11 = vsyncpa [#allocation4], 0 }
   0x4   :  { %13 = vsyncpa [#allocation4 + $0x1], 0  ;;  %s1126_s9 = smov 0   ;;  %s1128_s10 = smov 0  }
   0x5   :  { %s1130_s11 = smov 0   ;;  %s1132_s12 = smov 0  }
   0x6   :  { %s1134_s13 = smov 0   ;;  %s1136_s14 = smov 0  }
   0x7 LB: > { %s770_s15 = sadd.s32 4294967295, %s1099_s14   ;;  %s771_s16 = sadd.s32 4294967294, %s1099_s14   ;;  %s1099_s14 = sphi %s1136_s14, %s19_s14   ;;  %s1095_s13 = sphi %s1134_s13, %s1375_s13   ;;  %s1091_s12 = sphi %s1132_s12, %s1374_s12   ;;  %s1087_s11 = sphi %s1130_s11, %s1373_s11   ;;  %s1083_s10 = sphi %s1128_s10, %s1372_s10   ;;  %s1079_s9 = sphi %s1126_s9, %s1371_s9  }
   0x8   : > { %p53_p0 = scmp.ne.s32.totalorder %s1083_s10, %s1079_s9  ;;  %p1160_p1 = scmp.eq.s32.totalorder %s770_s15, 0 }
   0x9   : > { %p1164_p2 = scmp.eq.s32.totalorder %s770_s15, 1  ;;  %p106_p3 = scmp.eq.s32.totalorder %s771_s16, 1 }
   0xa   : > { %s1356_s17 = scalar_select %p1160_p1, 1, 0 }
   0xb   : > { %s1357_s18 = scalar_select %p1164_p2, 1, 0 }
   0xc   : > { %p1170_p4 = por %p1160_p1, %p53_p0  ;;  %p772_p5 = scmp.ge.s32.totalorder %s1099_s14, 1 }
   0xd   : > { %p1175_p6 = por %p106_p3, %p53_p0  ;;  %p113_p7 = scmp.lt.s32.totalorder %s1099_s14, 3 }
   0xe   : > { %s1358_s19 = scalar_select %p1170_p4, 1, 0 }
   0xf   : > { %s1359_s20 = scalar_select %p1175_p6, 1, 0 }
  0x10   : > { %p1180_p8 = pnand %p772_p5, %p113_p7  ;;  %s1101_s22 = smov [#allocation5]  }
  0x11   : > { %s125_s23 = sshll.u32 %s1101_s22, 4  ;;  %s31_s25 = sadd.s32 1, %s1095_s13  ;;  %s126_s23 = int_to_ptr.vmem [resolvable:$true] %s125_s23 }
  0x12   : > { %s1360_s21 = scalar_select %p1180_p8, 1, 0 }
  0x13   : > { %p883_p9 = pneg %p1180_p8  ;;  %s955_s28 = scalar_lea.hbm %s1350_s1, 256 }
  0x14   : > { %p956_p12 = scmp.ne.s32.totalorder %s1350_s1, %s955_s28  ;;  %p962_p5 = scmp.lt.u32.totalorder %s955_s28, %s1350_s1 }
  0x15   : > { %p1189_p11 = pnand %p883_p9, %p1160_p1 }
  0x17   : > { %p957_p13 = pneg %p1189_p11 }
  0x19   : > { %p958_p0 = pnand %p957_p13, %p956_p12 }
  0x1b   : > { %p959_p3 = pneg %p958_p0 }
  0x1d   : > { %p964_p7 = pnand %p962_p5, %p959_p3 }
  0x1f   : > { %967 = shalt.err (!%p964_p7)
}
  0x20   : > { %s968_s5 = scalar_lea.vmem %s126_s23, 256  ;;  %p976_p1 = scmp.lt.s32.totalorder %s126_s23, %s126_s23 }
  0x21   : > { %p969_p9 = scmp.ne.s32.totalorder %s126_s23, %s968_s5  ;;  %p977_p4 = scmp.lt.s32.totalorder %s968_s5, %s968_s5 }
  0x23   : > { %p971_p10 = pnand %p969_p9, %p957_p13  ;;  %p978_p8 = por %p977_p4, %p976_p1 }
  0x25   : > { %p972_p6 = pneg %p971_p10 }
  0x27   : > { %p979_p2 = pnand %p978_p8, %p972_p6 }
  0x29   : > { %982 = shalt.err (!%p979_p2)
}
  0x2a   : > { %s1102_s6 = smov 128   ;;  %s1103_s7 = smov 8  }
  0x2b   : > { %886 = dma.hbm_to_vmem [thread:$0]  (!%p1189_p11), %s1350_s1, 256, %s126_s23, [#allocation6], %s1102_s6, %s1102_s6, %s1103_s7  }
  0x2c   : > { %p33_p1 = scmp.ge.s32.totalorder %s31_s25, 2  ;;  %s40_s16 = sadd.s32 1, %s1087_s11 }
  0x2d   : > { %p47_p2 = scmp.ne.s32.totalorder %s1087_s11, %s1083_s10  ;;  %p48_p4 = scmp.eq.s32.totalorder %s1099_s14, 0 }
  0x2e   : > { %s1377_s25 = smov (%p33_p1, %s31_s25), 0  ;;  %p1363_p8 = scmp.ne.s32.totalorder %s1357_s18, 0 }
  0x2f   : > { %p1216_p6 = por %p48_p4, %p47_p2  ;;  %s35_s24 = ssub.s32 %s1095_s13, %s1377_s25 }
  0x30   : > { %p1222_p10 = por %p1363_p8, %p47_p2  ;;  %p896_p12 = scmp.lt.s32.totalorder %s1099_s14, 2 }
  0x31   : > { %p38_p11 = scmp.eq.s32.totalorder %s35_s24, 0  ;;  %s139_s23 = sand.u32 1, %s1087_s11  }
  0x32   : > { %s775_s27 = sshll.u32 %s139_s23, 3  ;;  %s776_s29 = sshll.u32 %s1095_s13, 7 }
  0x33   : > { %s1231_s28 = scalar_select %p38_p11, %s1087_s11, %s40_s16  }
  0x34   : > { %s1237_s4 = scalar_lea.hbm %s1349_s0, %s776_s29  ;;  %s143_s18 = scalar_lea.vmem [#allocation2], %s775_s27 }
  0x35   : > { %s151_s5 = sshll.u32 %s143_s18, 4  ;;  %p1243_p13 = pnand %p896_p12, %p1216_p6  ;;  %s1239_s5 = int_to_ptr.vmem [resolvable:$true] %s151_s5 }
  0x36   : > { %s140_s7 = scalar_lea.sflag [#allocation3], %s139_s23  ;;  %s983_s8 = scalar_lea.hbm %s1237_s4, 128 }
  0x37   : > { %p984_p0 = scmp.ne.s32.totalorder %s1237_s4, %s983_s8  ;;  %p985_p3 = pneg %p1243_p13 }
  0x38   : > { %s988_s24 = scalar_lea.hbm %s1349_s0, 256  ;;  %p989_p9 = scmp.lt.u32.totalorder %s1237_s4, %s1349_s0 }
  0x39   : > { %p986_p5 = pnand %p985_p3, %p984_p0  ;;  %p990_p1 = scmp.lt.u32.totalorder %s988_s24, %s983_s8 }
  0x3a   : > { %p992_p4 = scmp.lt.u32.totalorder %s983_s8, %s1237_s4 }
  0x3b   : > { %p987_p7 = pneg %p986_p5  ;;  %p991_p2 = por %p990_p1, %p989_p9 }
  0x3d   : > { %p993_p6 = por %p992_p4, %p991_p2 }
  0x3f   : > { %p994_p8 = pnand %p993_p6, %p987_p7 }
  0x41   : > { %997 = shalt.err (!%p994_p8)
}
  0x42   : > { %s998_s23 = scalar_lea.vmem %s1239_s5, 128  ;;  %s1104_s29 = smov [#allocation2]  }
  0x43   : > { %p999_p12 = scmp.ne.s32.totalorder %s1239_s5, %s998_s23  ;;  %s1003_s30 = sshll.u32 %s1104_s29, 4  ;;  %s1004_s30 = int_to_ptr.vmem [resolvable:$false] %s1003_s30 }
  0x44   : > { %s1005_s3 = scalar_lea.vmem %s1004_s30, 256  ;;  %p1006_p5 = scmp.lt.s32.totalorder %s1239_s5, %s1004_s30 }
  0x45   : > { %p1001_p11 = pnand %p999_p12, %p985_p3  ;;  %p1007_p9 = scmp.lt.s32.totalorder %s1005_s3, %s998_s23 }
  0x47   : > { %p1002_p0 = pneg %p1001_p11  ;;  %p1008_p1 = por %p1007_p9, %p1006_p5 }
  0x49   : > { %p1009_p2 = pnand %p1008_p1, %p1002_p0 }
  0x4b   : > { %1012 = shalt.err (!%p1009_p2)
}
  0x4c   : > { %890 = dma.hbm_to_vmem [thread:$0]  (!%p1243_p13), %s1237_s4, 128, %s1239_s5, %s140_s7  }
  0x4d   : > { %p1366_p7 = scmp.ne.s32.totalorder %s1360_s21, 0 }
  0x4e   : > { %s1275_s18 = sand.u32 (!%p1366_p7), 1, %s1083_s10   ;;  %p1367_p3 = scmp.ne.s32.totalorder (!%p1366_p7), %s1358_s19, 0 }
  0x4f   : > { %160 = sbr.rel (%p1366_p7) target bundleno = 348 (0x15c), region = 28  ;;  %s778_s8 = sshll.u32 (!%p1366_p7), %s1275_s18, 3 }
  0x50   : > { %s163_s15 = scalar_lea.sflag (!%p1366_p7), [#allocation3], %s1275_s18  ;;  %s166_s16 = scalar_lea.vmem (!%p1366_p7), [#allocation2], %s778_s8 }
  0x56   : > { %1066 = dma.done.wait (%p1367_p3), %s163_s15, 128  }
  0x57   : > { %1068 = vsyncadd (%p1367_p3), %s163_s15, 4294967168  ;;  %p1368_p4 = scmp.ne.s32.totalorder %s1356_s17, 0 }
  0x59   : > { %1070 = dma.done.wait (%p1368_p4), [#allocation6], 256  }
  0x5a   : > { %1072 = vsyncadd (%p1368_p4), [#allocation6], 4294967040  ;;  %v1105_v0 = vmov 0.0|0.0   ;;  %vm1106_vm0 = vmmov 0   ;;  %v1107_v1 = vmov 0.0   ;;  %vm195_vm1 = vcmask 130048  }
  0x5b   : > { %857 = vmatprep.subr.bf16.mxu0 %v1105_v0  ;;  %831 = vmatprep.mubr.msk.f32.mxu0 %vm1106_vm0, %v1107_v1  ;;  %v193_v2 = vld [vmem:[#allocation5] sm:$0xff]  ;;  %v194_v3 = vld [vmem:[#allocation5 + $0x8] sm:$0xff]  ;;  %v192_v4 = vld [vmem:[%s166_s16] sm:$0xff]  ;;  %s780_s17 = sshll.u32 %s1275_s18, 4  ;;  %s787_s4 = sshll.u32 %s1091_s12, 8 }
  0x5c   : > { %848 = vmatprep.subr.bf16.mxu1 %v1105_v0  ;;  %810 = vmatprep.mubr.msk.f32.mxu1 %vm1106_vm0, %v1107_v1  ;;  %v200_v5 = vand.u32 4294901760, %v193_v2  ;;  %v203_v6 = vand.u32 4294901760, %v194_v3  ;;  %v197_v7 = vsel %vm195_vm1, %v192_v4, 0  ;;  %s190_s19 = scalar_lea.vmem [#allocation7], %s780_s17  ;;  %s1300_s7 = scalar_lea.hbm %s1351_s2, %s787_s4 }
  0x5d   : > { %v266_v8 = vand.u32 4294901760, %v197_v7  ;;  %s676_s21 = sshll.u32 %s190_s19, 4  ;;  %s662_s24 = scalar_lea.sflag [#allocation4], %s1275_s18  ;;  %s1295_s21 = int_to_ptr.vmem [resolvable:$true] %s676_s21 }
  0x5e   : > { %v849_v9 = vpack.c.bf16 %v203_v6, %v200_v5  ;;  %v278_v10 = vsub.f32 %v193_v2, %v200_v5  ;;  %v285_v11 = vsub.f32 %v194_v3, %v203_v6  ;;  %s1013_s22 = scalar_lea.vmem %s1295_s21, 256  ;;  %s1108_s12 = smov [#allocation7]  }
  0x5f   : > { %v267_v12 = vsub.f32 %v197_v7, %v266_v8  ;;  %p1014_p13 = scmp.ne.s32.totalorder %s1295_s21, %s1013_s22  ;;  %s1017_s27 = sshll.u32 %s1108_s12, 4  ;;  %s1018_s27 = int_to_ptr.vmem [resolvable:$false] %s1017_s27 }
  0x60   : > { %859 = vmatpush3.bf16.msra.mxu0 %v849_v9  ;;  %850 = vmatpush3.bf16.msra.mxu1 %v849_v9  ;;  %v279_v13 = vand.u32 4294901760, %v278_v10  ;;  %v286_v14 = vand.u32 4294901760, %v285_v11  ;;  %v855_v24 = vpack.c.bf16 %v285_v11, %v278_v10  ;;  %s1019_s23 = scalar_lea.vmem %s1018_s27, 512  ;;  %p1020_p12 = scmp.lt.s32.totalorder %s1295_s21, %s1018_s27 }
  0x61   : > { %v268_v15 = vand.u32 4294901760, %v267_v12  ;;  %851 = vmatprep.subr.bf16.mxu1 %v1105_v0  ;;  %860 = vmatprep.subr.bf16.mxu0 %v1105_v0  ;;  %p1015_p6 = pnand %p1014_p13, %p1222_p10  ;;  %p1021_p11 = scmp.lt.s32.totalorder %s1019_s23, %s1013_s22 }
  0x62   : > { %v280_v16 = vsub.f32 %v278_v10, %v279_v13  ;;  %v287_v17 = vsub.f32 %v285_v11, %v286_v14  ;;  %v861_v18 = vpack.c.bf16 %v286_v14, %v279_v13 }
  0x63   : > { %832 = vmatmul.mubr.f32.vlgmr.msra.gmra.mrb[0].mxu0 %v268_v15  ;;  %v269_v19 = vsub.f32 %v267_v12, %v268_v15  ;;  %p1016_p8 = pneg %p1015_p6  ;;  %p1022_p0 = por %p1021_p11, %p1020_p12 }
  0x64   : > { %v281_v20 = vand.u32 4294901760, %v280_v16  ;;  %v288_v21 = vand.u32 4294901760, %v287_v17  ;;  %862 = vmatpush3.bf16.msra.mxu0 %v861_v18  ;;  %838 = vmatprep.mubr.msk.f32.mxu0 %vm1106_vm0, %v1107_v1 }
  0x65   : > { %v270_v22 = vand.u32 4294901760, %v269_v19  ;;  %863 = vmatprep.subr.bf16.mxu0 %v1105_v0  ;;  %p1023_p5 = pnand %p1022_p0, %p1016_p8 }
  0x66   : > { %v852_v23 = vpack.c.bf16 %v288_v21, %v281_v20 }
  0x67   : > { %811 = vmatmul.mubr.f32.vlgmr.msra.gmra.mrb[0].mxu1 %v270_v22 }
  0x68   : > { %853 = vmatpush3.bf16.msra.mxu1 %v852_v23  ;;  %817 = vmatprep.mubr.msk.f32.mxu1 %vm1106_vm0, %v1107_v1 }
  0x69   : > { %854 = vmatprep.subr.bf16.mxu1 %v1105_v0 }
  0x6b   : > { %839 = vmatmul.mubr.f32.vlgmr.msra.gmra.mrb[0].mxu0 %v266_v8 }
  0x6c   : > { %865 = vmatpush3.bf16.msra.mxu0 %v849_v9  ;;  %845 = vmatprep.mubr.msk.f32.mxu0 %vm1106_vm0, %v1107_v1 }
  0x6f   : > { %818 = vmatmul.mubr.f32.vlgmr.msra.gmra.mrb[0].mxu1 %v266_v8 }
  0x70   : > { %856 = vmatpush3.bf16.msra.mxu1 %v855_v24  ;;  %824 = vmatprep.mubr.msk.f32.mxu1 %vm1106_vm0, %v1107_v1 }
  0x73   : > { %846 = vmatmul.mubr.f32.vlgmr.msra.gmra.mrb[0].mxu0 %v266_v8 }
  0x77   : > { %825 = vmatmul.mubr.f32.vlgmr.msra.gmra.mrb[0].mxu1 %v267_v12 }
 0x146   : > { %v654_v25 = vpop.f32.mrb[0].mxu0 }
 0x147   : > { %v847_v26 = vpop.f32.mrb[1].mxu0 }
 0x14a   : > { %v429_v27 = vpop.f32.mrb[0].mxu1 }
 0x14b   : > { %v866_v28 = vadd.f32 %v654_v25, %v429_v27  ;;  %v826_v29 = vpop.f32.mrb[1].mxu1 }
 0x14d   : > { %658 = vst [vmem:[%s190_s19] ss:$2 sm:$0xff] %v866_v28  ;;  %781 = vst [vmem:[%s190_s19 + $0x1] ss:$2 sm:$0xff] %v866_v28 }
 0x14e   : > { %1026 = shalt.err (!%p1023_p5)
}
 0x14f   : > { %s1027_s29 = scalar_lea.hbm %s1300_s7, 256  ;;  %s1031_s8 = scalar_lea.hbm %s1351_s2, 512 }
 0x150   : > { %p1028_p9 = scmp.ne.s32.totalorder %s1300_s7, %s1027_s29  ;;  %p1032_p7 = scmp.lt.u32.totalorder %s1300_s7, %s1351_s2 }
 0x151   : > { %p1033_p3 = scmp.lt.u32.totalorder %s1031_s8, %s1027_s29  ;;  %p1035_p13 = scmp.lt.u32.totalorder %s1027_s29, %s1300_s7 }
 0x152   : > { %p1029_p1 = pnand %p1028_p9, %p1222_p10 }
 0x153   : > { %p1034_p4 = por %p1033_p3, %p1032_p7 }
 0x154   : > { %p1030_p2 = pneg %p1029_p1 }
 0x155   : > { %p1036_p6 = por %p1035_p13, %p1034_p4 }
 0x157   : > { %p1037_p8 = pnand %p1036_p6, %p1030_p2 }
 0x159   : > { %1040 = shalt.err (!%p1037_p8)
}
 0x15a   : > { %s1109_s17 = smov 128   ;;  %s1110_s19 = smov 8  }
 0x15b   : > { %881 = dma.vmem_to_hbm [thread:$0]  (%p1222_p10), %s1295_s21, 256, %s1300_s7, %s662_s24, %s1109_s17, %s1109_s17, %s1110_s19  }
 0x15c PF: > { %s691_s4 = sand.u32 1, %s1079_s9   ;;  %p1369_p12 = scmp.ne.s32.totalorder %s1359_s20, 0 }
 0x15d   : > { %p1370_p11 = scmp.ge.s32.totalorder %s1099_s14, 2  ;;  %s692_s5 = scalar_lea.sflag [#allocation4], %s691_s4 }
 0x15f   : > { %p892_p0 = pnand %p1370_p11, %p1369_p12 }
 0x161   : > { %1074 = dma.done.wait (!%p892_p0), %s692_s5, 256  }
 0x162   : > { %1076 = vsyncadd (!%p892_p0), %s692_s5, 4294967040  ;;  %s19_s14 = sadd.s32 1, %s1099_s14   ;;  %s1371_s9 = smov %s1083_s10 }
 0x163   : > { %p16_p5 = scmp.ge.s32.totalorder %s19_s14, 4   ;;  %s1372_s10 = smov %s1087_s11 }
 0x164   : > { %s1373_s11 = smov %s1231_s28  ;;  %s1374_s12 = smov %s1095_s13 }
 0x165   : > { %s1375_s13 = smov %s1377_s25  ;;  %18 = sbr.rel (!%p16_p5) target bundleno = 7 (0x7), region = 78 }
 0x16c   :  { %697 = vsyncpa [#allocation3], 1 }
 0x16d   :  { %699 = vsyncpa [#allocation3 + $0x1], 1 }
 0x16e   :  { %700 = vsyncpa [#allocation6], 1 }
 0x16f   :  { %701 = vsyncpa [#allocation4], 1 }
 0x170   :  { %703 = vsyncpa [#allocation4 + $0x1], 1 }

// kernel: tpu_custom_call.1
= control target key start
LH: loop header
LB: loop body
LE: loop exit
PB: predicated region body
PF: predicated region fallthrough
CT: control target
= control target key end

     0   :  { %7 = vsyncpa [#allocation3], 0  ;;  %s1470_s0 = inlined_call_operand.hbm [shape: f32[16,16], index: 0, kind: input, shape index: {}]   ;;  %s1471_s1 = inlined_call_operand.hbm [shape: f32[16,48], index: 1, kind: input, shape index: {}]   ;;  %s1472_s2 = inlined_call_operand.hbm [shape: f32[32,48], index: 2, kind: output, shape index: {}]  }
   0x1   :  { %9 = vsyncpa [#allocation3 + $0x1], 0 }
   0x2   :  { %10 = vsyncpa [#allocation6], 0 }
   0x3   :  { %11 = vsyncpa [#allocation4], 0 }
   0x4   :  { %13 = vsyncpa [#allocation4 + $0x1], 0  ;;  %s1247_s9 = smov 0   ;;  %s1249_s10 = smov 0  }
   0x5   :  { %s1251_s11 = smov 0   ;;  %s1253_s12 = smov 0  }
   0x6   :  { %s1255_s13 = smov 0   ;;  %s1257_s14 = smov 0  }
   0x7 LB: > { %s888_s15 = sadd.s32 4294967295, %s1218_s14   ;;  %s889_s16 = sadd.s32 4294967294, %s1218_s14   ;;  %s1218_s14 = sphi %s1257_s14, %s19_s14   ;;  %s1214_s13 = sphi %s1255_s13, %s1496_s13   ;;  %s1210_s12 = sphi %s1253_s12, %s1495_s12   ;;  %s1206_s11 = sphi %s1251_s11, %s1494_s11   ;;  %s1202_s10 = sphi %s1249_s10, %s1493_s10   ;;  %s1198_s9 = sphi %s1247_s9, %s1492_s9  }
   0x8   : > { %p53_p0 = scmp.ne.s32.totalorder %s1202_s10, %s1198_s9  ;;  %p1281_p1 = scmp.eq.s32.totalorder %s888_s15, 0 }
   0x9   : > { %p1285_p2 = scmp.eq.s32.totalorder %s888_s15, 1  ;;  %p106_p3 = scmp.eq.s32.totalorder %s889_s16, 1 }
   0xa   : > { %s1477_s17 = scalar_select %p1281_p1, 1, 0 }
   0xb   : > { %s1478_s18 = scalar_select %p1285_p2, 1, 0 }
   0xc   : > { %p1291_p4 = por %p1281_p1, %p53_p0  ;;  %p890_p5 = scmp.ge.s32.totalorder %s1218_s14, 1 }
   0xd   : > { %p1296_p6 = por %p106_p3, %p53_p0  ;;  %p113_p7 = scmp.lt.s32.totalorder %s1218_s14, 3 }
   0xe   : > { %s1479_s19 = scalar_select %p1291_p4, 1, 0 }
   0xf   : > { %s1480_s20 = scalar_select %p1296_p6, 1, 0 }
  0x10   : > { %p1301_p8 = pnand %p890_p5, %p113_p7  ;;  %s1220_s22 = smov [#allocation5]  }
  0x11   : > { %s125_s23 = sshll.u32 %s1220_s22, 4  ;;  %s31_s25 = sadd.s32 1, %s1214_s13  ;;  %s126_s23 = int_to_ptr.vmem [resolvable:$true] %s125_s23 }
  0x12   : > { %s1481_s21 = scalar_select %p1301_p8, 1, 0 }
  0x13   : > { %p1000_p9 = pneg %p1301_p8  ;;  %s1074_s28 = scalar_lea.hbm %s1471_s1, 256 }
  0x14   : > { %p1075_p12 = scmp.ne.s32.totalorder %s1471_s1, %s1074_s28  ;;  %p1081_p5 = scmp.lt.u32.totalorder %s1074_s28, %s1471_s1 }
  0x15   : > { %p1310_p11 = pnand %p1000_p9, %p1281_p1 }
  0x17   : > { %p1076_p13 = pneg %p1310_p11 }
  0x19   : > { %p1077_p0 = pnand %p1076_p13, %p1075_p12 }
  0x1b   : > { %p1078_p3 = pneg %p1077_p0 }
  0x1d   : > { %p1083_p7 = pnand %p1081_p5, %p1078_p3 }
  0x1f   : > { %1086 = shalt.err (!%p1083_p7)
}
  0x20   : > { %s1087_s5 = scalar_lea.vmem %s126_s23, 256  ;;  %p1095_p1 = scmp.lt.s32.totalorder %s126_s23, %s126_s23 }
  0x21   : > { %p1088_p9 = scmp.ne.s32.totalorder %s126_s23, %s1087_s5  ;;  %p1096_p4 = scmp.lt.s32.totalorder %s1087_s5, %s1087_s5 }
  0x23   : > { %p1090_p10 = pnand %p1088_p9, %p1076_p13  ;;  %p1097_p8 = por %p1096_p4, %p1095_p1 }
  0x25   : > { %p1091_p6 = pneg %p1090_p10 }
  0x27   : > { %p1098_p2 = pnand %p1097_p8, %p1091_p6 }
  0x29   : > { %1101 = shalt.err (!%p1098_p2)
}
  0x2a   : > { %s1221_s6 = smov 128   ;;  %s1222_s7 = smov 8  }
  0x2b   : > { %1003 = dma.hbm_to_vmem [thread:$0]  (!%p1310_p11), %s1471_s1, 256, %s126_s23, [#allocation6], %s1221_s6, %s1221_s6, %s1222_s7  }
  0x2c   : > { %p33_p1 = scmp.ge.s32.totalorder %s31_s25, 2  ;;  %s40_s16 = sadd.s32 1, %s1206_s11 }
  0x2d   : > { %p47_p2 = scmp.ne.s32.totalorder %s1206_s11, %s1202_s10  ;;  %p48_p4 = scmp.eq.s32.totalorder %s1218_s14, 0 }
  0x2e   : > { %s1498_s25 = smov (%p33_p1, %s31_s25), 0  ;;  %p1484_p8 = scmp.ne.s32.totalorder %s1478_s18, 0 }
  0x2f   : > { %p1337_p6 = por %p48_p4, %p47_p2  ;;  %s35_s24 = ssub.s32 %s1214_s13, %s1498_s25 }
  0x30   : > { %p1343_p10 = por %p1484_p8, %p47_p2  ;;  %p1013_p12 = scmp.lt.s32.totalorder %s1218_s14, 2 }
  0x31   : > { %p38_p11 = scmp.eq.s32.totalorder %s35_s24, 0  ;;  %s139_s23 = sand.u32 1, %s1206_s11  }
  0x32   : > { %s893_s27 = sshll.u32 %s139_s23, 3  ;;  %s894_s29 = sshll.u32 %s1214_s13, 7 }
  0x33   : > { %s1352_s28 = scalar_select %p38_p11, %s1206_s11, %s40_s16  }
  0x34   : > { %s1358_s4 = scalar_lea.hbm %s1470_s0, %s894_s29  ;;  %s143_s18 = scalar_lea.vmem [#allocation2], %s893_s27 }
  0x35   : > { %s151_s5 = sshll.u32 %s143_s18, 4  ;;  %p1364_p13 = pnand %p1013_p12, %p1337_p6  ;;  %s1360_s5 = int_to_ptr.vmem [resolvable:$true] %s151_s5 }
  0x36   : > { %s140_s7 = scalar_lea.sflag [#allocation3], %s139_s23  ;;  %s1102_s8 = scalar_lea.hbm %s1358_s4, 128 }
  0x37   : > { %p1103_p0 = scmp.ne.s32.totalorder %s1358_s4, %s1102_s8  ;;  %p1104_p3 = pneg %p1364_p13 }
  0x38   : > { %s1107_s24 = scalar_lea.hbm %s1470_s0, 256  ;;  %p1108_p9 = scmp.lt.u32.totalorder %s1358_s4, %s1470_s0 }
  0x39   : > { %p1105_p5 = pnand %p1104_p3, %p1103_p0  ;;  %p1109_p1 = scmp.lt.u32.totalorder %s1107_s24, %s1102_s8 }
  0x3a   : > { %p1111_p4 = scmp.lt.u32.totalorder %s1102_s8, %s1358_s4 }
  0x3b   : > { %p1106_p7 = pneg %p1105_p5  ;;  %p1110_p2 = por %p1109_p1, %p1108_p9 }
  0x3d   : > { %p1112_p6 = por %p1111_p4, %p1110_p2 }
  0x3f   : > { %p1113_p8 = pnand %p1112_p6, %p1106_p7 }
  0x41   : > { %1116 = shalt.err (!%p1113_p8)
}
  0x42   : > { %s1117_s23 = scalar_lea.vmem %s1360_s5, 128  ;;  %s1223_s29 = smov [#allocation2]  }
  0x43   : > { %p1118_p12 = scmp.ne.s32.totalorder %s1360_s5, %s1117_s23  ;;  %s1122_s30 = sshll.u32 %s1223_s29, 4  ;;  %s1123_s30 = int_to_ptr.vmem [resolvable:$false] %s1122_s30 }
  0x44   : > { %s1124_s3 = scalar_lea.vmem %s1123_s30, 256  ;;  %p1125_p5 = scmp.lt.s32.totalorder %s1360_s5, %s1123_s30 }
  0x45   : > { %p1120_p11 = pnand %p1118_p12, %p1104_p3  ;;  %p1126_p9 = scmp.lt.s32.totalorder %s1124_s3, %s1117_s23 }
  0x47   : > { %p1121_p0 = pneg %p1120_p11  ;;  %p1127_p1 = por %p1126_p9, %p1125_p5 }
  0x49   : > { %p1128_p2 = pnand %p1127_p1, %p1121_p0 }
  0x4b   : > { %1131 = shalt.err (!%p1128_p2)
}
  0x4c   : > { %1007 = dma.hbm_to_vmem [thread:$0]  (!%p1364_p13), %s1358_s4, 128, %s1360_s5, %s140_s7  }
  0x4d   : > { %p1487_p7 = scmp.ne.s32.totalorder %s1481_s21, 0 }
  0x4e   : > { %s1396_s18 = sand.u32 (!%p1487_p7), 1, %s1202_s10   ;;  %p1488_p3 = scmp.ne.s32.totalorder (!%p1487_p7), %s1479_s19, 0 }
  0x4f   : > { %160 = sbr.rel (%p1487_p7) target bundleno = 366 (0x16e), region = 28  ;;  %s896_s8 = sshll.u32 (!%p1487_p7), %s1396_s18, 3 }
  0x50   : > { %s163_s15 = scalar_lea.sflag (!%p1487_p7), [#allocation3], %s1396_s18  ;;  %s166_s16 = scalar_lea.vmem (!%p1487_p7), [#allocation2], %s896_s8 }
  0x56   : > { %1185 = dma.done.wait (%p1488_p3), %s163_s15, 128  }
  0x57   : > { %1187 = vsyncadd (%p1488_p3), %s163_s15, 4294967168  ;;  %p1489_p4 = scmp.ne.s32.totalorder %s1477_s17, 0 }
  0x59   : > { %1189 = dma.done.wait (%p1489_p4), [#allocation6], 256  }
  0x5a   : > { %1191 = vsyncadd (%p1489_p4), [#allocation6], 4294967040  ;;  %v1224_v0 = vmov 0.0|0.0   ;;  %vm1225_vm0 = vmmov 0   ;;  %v1226_v1 = vmov 0.0   ;;  %vm195_vm1 = vcmask 130048  }
  0x5b   : > { %974 = vmatprep.subr.bf16.mxu0 %v1224_v0  ;;  %948 = vmatprep.mubr.msk.f32.mxu0 %vm1225_vm0, %v1226_v1  ;;  %v193_v2 = vld [vmem:[#allocation5] sm:$0xff]  ;;  %v194_v3 = vld [vmem:[#allocation5 + $0x8] sm:$0xff]  ;;  %v192_v4 = vld [vmem:[%s166_s16] sm:$0xff]  ;;  %v1227_v25 = vmov 1966171168   ;;  %v663_v27 = vlaneseq  ;;  %s898_s17 = sshll.u32 %s1396_s18, 4 }
  0x5c   : > { %965 = vmatprep.subr.bf16.mxu1 %v1224_v0  ;;  %927 = vmatprep.mubr.msk.f32.mxu1 %vm1225_vm0, %v1226_v1  ;;  %v200_v5 = vand.u32 4294901760, %v193_v2  ;;  %v203_v6 = vand.u32 4294901760, %v194_v3  ;;  %v197_v7 = vsel %vm195_vm1, %v192_v4, 0  ;;  %v661_v26 = vunpack.c.l.s4 %v1227_v25  ;;  %s904_s19 = sshll.u32 %s1210_s12, 8  ;;  %s190_s21 = scalar_lea.vmem [#allocation7], %s898_s17 }
  0x5d   : > { %v266_v8 = vand.u32 4294901760, %v197_v7  ;;  %v664_v29 = vshrl.u32 %v663_v27, 7  ;;  %v1228_v36 = vmov 1983009808   ;;  %s794_s4 = sshll.u32 %s190_s21, 4  ;;  %vm776_vm2 = vcmask 392192   ;;  %s1419_s7 = scalar_lea.hbm %s1472_s2, %s904_s19  ;;  %s1421_s4 = int_to_ptr.vmem [resolvable:$true] %s794_s4 }
  0x5e   : > { %v966_v9 = vpack.c.bf16 %v203_v6, %v200_v5  ;;  %v278_v10 = vsub.f32 %v193_v2, %v200_v5  ;;  %v285_v11 = vsub.f32 %v194_v3, %v203_v6  ;;  %v662_v28 = vunpack.c.0.s8 %v661_v26  ;;  %s780_s12 = scalar_lea.sflag [#allocation4], %s1396_s18  ;;  %s1132_s24 = scalar_lea.vmem %s1421_s4, 256 }
  0x5f   : > { %v267_v12 = vsub.f32 %v197_v7, %v266_v8  ;;  %v743_v37 = vunpack.c.l.s4 %v1228_v36  ;;  %v710_v43 = vsub.s32 0, %v664_v29  ;;  %p1133_p13 = scmp.ne.s32.totalorder %s1421_s4, %s1132_s24  ;;  %s1229_s22 = smov [#allocation7]  }
  0x60   : > { %976 = vmatpush3.bf16.msra.mxu0 %v966_v9  ;;  %967 = vmatpush3.bf16.msra.mxu1 %v966_v9  ;;  %v279_v13 = vand.u32 4294901760, %v278_v10  ;;  %v286_v14 = vand.u32 4294901760, %v285_v11  ;;  %v972_v24 = vpack.c.bf16 %v285_v11, %v278_v10  ;;  %v665_v32 = vsub.s32 %v662_v28, %v664_v29  ;;  %s1136_s27 = sshll.u32 %s1229_s22, 4  ;;  %s1137_s27 = int_to_ptr.vmem [resolvable:$false] %s1136_s27 }
  0x61   : > { %v268_v15 = vand.u32 4294901760, %v267_v12  ;;  %968 = vmatprep.subr.bf16.mxu1 %v1224_v0  ;;  %977 = vmatprep.subr.bf16.mxu0 %v1224_v0  ;;  %v744_v44 = vunpack.c.0.s8 %v743_v37  ;;  %p1134_p6 = pnand %p1133_p13, %p1343_p10  ;;  %s1138_s23 = scalar_lea.vmem %s1137_s27, 512 }
  0x62   : > { %v280_v16 = vsub.f32 %v278_v10, %v279_v13  ;;  %v287_v17 = vsub.f32 %v285_v11, %v286_v14  ;;  %v978_v18 = vpack.c.bf16 %v286_v14, %v279_v13  ;;  %p1139_p12 = scmp.lt.s32.totalorder %s1421_s4, %s1137_s27  ;;  %p1140_p11 = scmp.lt.s32.totalorder %s1138_s23, %s1132_s24 }
  0x63   : > { %949 = vmatmul.mubr.f32.vlgmr.msra.gmra.mrb[0].mxu0 %v268_v15  ;;  %v269_v19 = vsub.f32 %v267_v12, %v268_v15  ;;  %v747_v55 = vsub.s32 %v744_v44, %v664_v29  ;;  %p1135_p8 = pneg %p1134_p6 }
  0x64   : > { %v281_v20 = vand.u32 4294901760, %v280_v16  ;;  %v288_v21 = vand.u32 4294901760, %v287_v17  ;;  %979 = vmatpush3.bf16.msra.mxu0 %v978_v18  ;;  %955 = vmatprep.mubr.msk.f32.mxu0 %vm1225_vm0, %v1226_v1  ;;  %p1141_p0 = por %p1140_p11, %p1139_p12 }
  0x65   : > { %v270_v22 = vand.u32 4294901760, %v269_v19  ;;  %980 = vmatprep.subr.bf16.mxu0 %v1224_v0 }
  0x66   : > { %v969_v23 = vpack.c.bf16 %v288_v21, %v281_v20  ;;  %p1142_p5 = pnand %p1141_p0, %p1135_p8 }
  0x67   : > { %928 = vmatmul.mubr.f32.vlgmr.msra.gmra.mrb[0].mxu1 %v270_v22 }
  0x68   : > { %970 = vmatpush3.bf16.msra.mxu1 %v969_v23  ;;  %934 = vmatprep.mubr.msk.f32.mxu1 %vm1225_vm0, %v1226_v1 }
  0x69   : > { %971 = vmatprep.subr.bf16.mxu1 %v1224_v0 }
  0x6b   : > { %956 = vmatmul.mubr.f32.vlgmr.msra.gmra.mrb[0].mxu0 %v266_v8 }
  0x6c   : > { %982 = vmatpush3.bf16.msra.mxu0 %v966_v9  ;;  %962 = vmatprep.mubr.msk.f32.mxu0 %vm1225_vm0, %v1226_v1 }
  0x6f   : > { %935 = vmatmul.mubr.f32.vlgmr.msra.gmra.mrb[0].mxu1 %v266_v8 }
  0x70   : > { %973 = vmatpush3.bf16.msra.mxu1 %v972_v24  ;;  %941 = vmatprep.mubr.msk.f32.mxu1 %vm1225_vm0, %v1226_v1 }
  0x73   : > { %963 = vmatmul.mubr.f32.vlgmr.msra.gmra.mrb[0].mxu0 %v266_v8 }
  0x77   : > { %942 = vmatmul.mubr.f32.vlgmr.msra.gmra.mrb[0].mxu1 %v267_v12 }
 0x146   : > { %v654_v30 = vpop.f32.mrb[0].mxu0 }
 0x147   : > { %v964_v31 = vpop.f32.mrb[1].mxu0 }
 0x14a   : > { %v429_v33 = vpop.f32.mrb[0].mxu1 }
 0x14b   : > { %v983_v34 = vadd.f32 %v654_v30, %v429_v33  ;;  %v943_v35 = vpop.f32.mrb[1].mxu1 }
 0x14d   : > { %v659_v38 = vcombine.high %v983_v34, %v983_v34  ;;  %v666_v39 = vrot.slane %v983_v34, %v665_v32 }
 0x14f   : > { %v673_v40 = vrot.slane %v659_v38, %v665_v32  ;;  %v674_v41 = vcombine.high %v666_v39, %v666_v39  ;;  %v682_v42 = vrot.slane %v666_v39, %v665_v32 }
 0x151   : > { %v675_v45 = vcombine.high %v673_v40, %v673_v40  ;;  %v689_v46 = vrot.slane %v673_v40, %v665_v32  ;;  %v696_v47 = vrot.slane %v674_v41, %v665_v32  ;;  %v704_v48 = vcombine.high %v682_v42, %v682_v42 }
 0x152   : > { %v711_v53 = vrot.slane %v682_v42, %v710_v43 }
 0x153   : > { %v703_v49 = vrot.slane %v675_v45, %v665_v32  ;;  %v705_v50 = vcombine.high %v689_v46, %v689_v46  ;;  %v706_v51 = vcombine.high %v696_v47, %v696_v47  ;;  %v715_v52 = vrot.slane %v696_v47, %v710_v43 }
 0x154   : > { %v719_v54 = vrot.slane %v704_v48, %v710_v43  ;;  %v727_v58 = vrot.slane %v689_v46, %v710_v43 }
 0x155   : > { %v707_v56 = vcombine.high %v703_v49, %v703_v49  ;;  %v723_v57 = vrot.slane %v706_v51, %v710_v43  ;;  %v731_v59 = vrot.slane %v703_v49, %v710_v43  ;;  %v740_v60 = vcombine.low %v711_v53, %v715_v52 }
 0x156   : > { %v735_v61 = vrot.slane %v705_v50, %v710_v43 }
 0x157   : > { %v739_v62 = vrot.slane %v707_v56, %v710_v43  ;;  %v741_v63 = vcombine.low %v719_v54, %v723_v57  ;;  %v757_v0 = vcombine.low %v727_v58, %v731_v59  ;;  %v748_v1 = vrot.slane %v740_v60, %v747_v55 }
 0x159   : > { %v755_v2 = vrot.slane %v741_v63, %v747_v55  ;;  %v758_v3 = vcombine.low %v735_v61, %v739_v62  ;;  %v765_v5 = vrot.slane %v757_v0, %v747_v55 }
 0x15b   : > { %v756_v4 = vcombine.low %v748_v1, %v755_v2  ;;  %v772_v6 = vrot.slane %v758_v3, %v747_v55 }
 0x15d   : > { %v773_v7 = vcombine.low %v765_v5, %v772_v6  ;;  %777 = vst.msk [vmem:[%s190_s21] sm:$0xff] %vm776_vm2, %v756_v4 }
 0x15f   : > { %778 = vst.msk [vmem:[%s190_s21 + $0x8] sm:$0xff] %vm776_vm2, %v773_v7 }
 0x160   : > { %1145 = shalt.err (!%p1142_p5)
}
 0x161   : > { %s1146_s29 = scalar_lea.hbm %s1419_s7, 256  ;;  %s1150_s8 = scalar_lea.hbm %s1472_s2, 512 }
 0x162   : > { %p1147_p9 = scmp.ne.s32.totalorder %s1419_s7, %s1146_s29  ;;  %p1151_p7 = scmp.lt.u32.totalorder %s1419_s7, %s1472_s2 }
 0x163   : > { %p1152_p3 = scmp.lt.u32.totalorder %s1150_s8, %s1146_s29  ;;  %p1154_p13 = scmp.lt.u32.totalorder %s1146_s29, %s1419_s7 }
 0x164   : > { %p1148_p1 = pnand %p1147_p9, %p1343_p10 }
 0x165   : > { %p1153_p4 = por %p1152_p3, %p1151_p7 }
 0x166   : > { %p1149_p2 = pneg %p1148_p1 }
 0x167   : > { %p1155_p6 = por %p1154_p13, %p1153_p4 }
 0x169   : > { %p1156_p8 = pnand %p1155_p6, %p1149_p2 }
 0x16b   : > { %1159 = shalt.err (!%p1156_p8)
}
 0x16c   : > { %s1230_s17 = smov 128   ;;  %s1231_s19 = smov 8  }
 0x16d   : > { %998 = dma.vmem_to_hbm [thread:$0]  (%p1343_p10), %s1421_s4, 256, %s1419_s7, %s780_s12, %s1230_s17, %s1230_s17, %s1231_s19  }
 0x16e PF: > { %s809_s21 = sand.u32 1, %s1198_s9   ;;  %p1490_p12 = scmp.ne.s32.totalorder %s1480_s20, 0 }
 0x16f   : > { %p1491_p11 = scmp.ge.s32.totalorder %s1218_s14, 2  ;;  %s810_s5 = scalar_lea.sflag [#allocation4], %s809_s21 }
 0x171   : > { %p1009_p0 = pnand %p1491_p11, %p1490_p12 }
 0x173   : > { %1193 = dma.done.wait (!%p1009_p0), %s810_s5, 256  }
 0x174   : > { %1195 = vsyncadd (!%p1009_p0), %s810_s5, 4294967040  ;;  %s19_s14 = sadd.s32 1, %s1218_s14   ;;  %s1492_s9 = smov %s1202_s10 }
 0x175   : > { %p16_p5 = scmp.ge.s32.totalorder %s19_s14, 4   ;;  %s1493_s10 = smov %s1206_s11 }
 0x176   : > { %s1494_s11 = smov %s1352_s28  ;;  %s1495_s12 = smov %s1214_s13 }
 0x177   : > { %s1496_s13 = smov %s1498_s25  ;;  %18 = sbr.rel (!%p16_p5) target bundleno = 7 (0x7), region = 77 }
 0x17e   :  { %815 = vsyncpa [#allocation3], 1 }
 0x17f   :  { %817 = vsyncpa [#allocation3 + $0x1], 1 }
 0x180   :  { %818 = vsyncpa [#allocation6], 1 }
 0x181   :  { %819 = vsyncpa [#allocation4], 1 }
 0x182   :  { %821 = vsyncpa [#allocation4 + $0x1], 1 }

// kernel: tpu_custom_call.1
= control target key start
LH: loop header
LB: loop body
LE: loop exit
PB: predicated region body
PF: predicated region fallthrough
CT: control target
= control target key end

     0   :  { %8 = vsyncpa [#allocation3], 0  ;;  %s1862_s0 = inlined_call_operand.vmem [shape: f32[16,8], index: 0, kind: input, shape index: {}]   ;;  %s1863_s1 = inlined_call_operand.vmem [shape: f32[16,16], index: 1, kind: input, shape index: {}]   ;;  %s1864_s2 = inlined_call_operand.hbm [shape: f32[16,48], index: 2, kind: input, shape index: {}]   ;;  %s1865_s3 = inlined_call_operand.hbm [shape: f32[32,48], index: 3, kind: output, shape index: {}]  }
   0x1   :  { %9 = vsyncpa [#allocation4], 0 }
   0x2   :  { %11 = vsyncpa [#allocation4 + $0x1], 0  ;;  %s1703_s12 = smov 0   ;;  %s1705_s13 = smov 0  }
   0x3   :  { %s1707_s14 = smov 0   ;;  %s1709_s15 = smov 0  }
   0x4   :  { %s1711_s16 = smov 0   ;;  %s1713_s17 = smov 0  }
   0x5 LB: > { %s1322_s18 = sadd.s32 4294967295, %s1675_s17   ;;  %s1323_s19 = sadd.s32 4294967294, %s1675_s17   ;;  %s1675_s17 = sphi %s1713_s17, %s17_s17   ;;  %s1671_s16 = sphi %s1711_s16, %s1883_s16   ;;  %s1667_s15 = sphi %s1709_s15, %s1882_s15   ;;  %s1663_s14 = sphi %s1707_s14, %s1881_s14   ;;  %s1659_s13 = sphi %s1705_s13, %s1880_s13   ;;  %s1655_s12 = sphi %s1703_s12, %s1879_s12  }
   0x6   : > { %s29_s20 = sadd.s32 1, %s1671_s16  ;;  %s108_s21 = sadd.s32 1, %s1663_s14 }
   0x7   : > { %p31_p0 = scmp.ge.s32.totalorder %s29_s20, 2  ;;  %p118_p1 = scmp.ne.s32.totalorder %s1663_s14, %s1659_s13 }
   0x8   : > { %p119_p2 = scmp.eq.s32.totalorder %s1322_s18, 1  ;;  %p124_p3 = scmp.ne.s32.totalorder %s1659_s13, %s1655_s12 }
   0x9   : > { %s1885_s20 = smov (%p31_p0, %s29_s20), 0  ;;  %p125_p5 = scmp.eq.s32.totalorder %s1323_s19, 1 }
   0xa   : > { %p1743_p4 = por %p119_p2, %p118_p1  ;;  %s103_s23 = ssub.s32 %s1671_s16, %s1885_s20 }
   0xb   : > { %p1324_p6 = scmp.ge.s32.totalorder %s1675_s17, 1  ;;  %p106_p7 = scmp.eq.s32.totalorder %s103_s23, 0 }
   0xc   : > { %s1870_s22 = scalar_select %p1743_p4, 1, 0 }
   0xd   : > { %p1750_p8 = por %p125_p5, %p124_p3  ;;  %p132_p9 = scmp.lt.s32.totalorder %s1675_s17, 3 }
   0xe   : > { %s1756_s25 = scalar_select %p106_p7, %s1663_s14, %s108_s21  }
   0xf   : > { %s1871_s24 = scalar_select %p1750_p8, 1, 0 }
  0x10   : > { %p1758_p10 = pnand %p1324_p6, %p132_p9  ;;  %p1762_p11 = scmp.eq.s32.totalorder %s1322_s18, 0 }
  0x11   : > { %s1677_s28 = smov [#allocation2]   ;;  %s1565_s6 = scalar_lea.hbm %s1864_s2, 256 }
  0x12   : > { %s1872_s26 = scalar_select %p1758_p10, 1, 0 }
  0x13   : > { %s1873_s27 = scalar_select %p1762_p11, 1, 0 }
  0x14   : > { %p1501_p12 = pneg %p1758_p10  ;;  %s147_s29 = sshll.u32 %s1677_s28, 4  ;;  %s148_s29 = int_to_ptr.vmem [resolvable:$true] %s147_s29 }
  0x15   : > { %p1566_p0 = scmp.ne.s32.totalorder %s1864_s2, %s1565_s6  ;;  %p1572_p5 = scmp.lt.u32.totalorder %s1565_s6, %s1864_s2 }
  0x16   : > { %p1770_p13 = pnand %p1762_p11, %p1501_p12 }
  0x18   : > { %p1567_p1 = pneg %p1770_p13 }
  0x1a   : > { %p1568_p2 = pnand %p1567_p1, %p1566_p0 }
  0x1c   : > { %p1569_p3 = pneg %p1568_p2 }
  0x1e   : > { %p1574_p6 = pnand %p1572_p5, %p1569_p3 }
  0x20   : > { %1577 = shalt.err (!%p1574_p6)
}
  0x21   : > { %s1578_s11 = scalar_lea.vmem %s148_s29, 256  ;;  %p1586_p8 = scmp.lt.s32.totalorder %s148_s29, %s148_s29 }
  0x22   : > { %p1579_p7 = scmp.ne.s32.totalorder %s148_s29, %s1578_s11  ;;  %p1587_p4 = scmp.lt.s32.totalorder %s1578_s11, %s1578_s11 }
  0x24   : > { %p1581_p9 = pnand %p1579_p7, %p1567_p1  ;;  %p1588_p11 = por %p1587_p4, %p1586_p8 }
  0x26   : > { %p1582_p12 = pneg %p1581_p9 }
  0x28   : > { %p1589_p10 = pnand %p1588_p11, %p1582_p12 }
  0x2a   : > { %1592 = shalt.err (!%p1589_p10)
}
  0x2b   : > { %s1678_s18 = smov 128   ;;  %s1679_s19 = smov 8  }
  0x2c   : > { %1504 = dma.hbm_to_vmem [thread:$0]  (!%p1770_p13), %s1864_s2, 256, %s148_s29, [#allocation3], %s1678_s18, %s1678_s18, %s1679_s19  }
  0x2d   : > { %p1875_p0 = scmp.ne.s32.totalorder %s1872_s26, 0 }
  0x2e   : > { %p1876_p2 = scmp.ne.s32.totalorder (!%p1875_p0), %s1873_s27, 0 }
  0x2f   : > { %173 = sbr.rel (%p1875_p0) target bundleno = 601 (0x259), region = 32 }
  0x36   : > { %1646 = dma.done.wait (%p1876_p2), [#allocation3], 256  }
  0x37   : > { %1648 = vsyncadd (%p1876_p2), [#allocation3], 4294967040  ;;  %p199_p4 = scmp.lt.s32.totalorder %s1667_s15, 1  ;;  %vm210_vm0 = vcmask 64512   ;;  %v208_v1 = vld [vmem:[%s1862_s0] sm:$0xff]  ;;  %v209_v2 = vld [vmem:[%s1862_s0 + $0x8] sm:$0xff] }
  0x38   : > { %v212_v4 = vsel %vm210_vm0, %v208_v1, 0  ;;  %v215_v5 = vsel %vm210_vm0, %v209_v2, 0  ;;  %v706_v20 = vld [vmem:[#allocation2] sm:$0xff]  ;;  %v707_v21 = vld [vmem:[#allocation2 + $0x8] sm:$0xff]  ;;  %vm708_vm1 = vcmask 130048   ;;  %s196_s27 = sand.u32 1, %s1659_s13  }
  0x39   : > { %s200_s28 = scalar_select %p199_p4, %s1667_s15, 1  ;;  %v283_v6 = vand.u32 4294901760, %v212_v4  ;;  %v293_v7 = vand.u32 4294901760, %v215_v5  ;;  %v716_v22 = vand.u32 4294901760, %v706_v20  ;;  %v719_v23 = vand.u32 4294901760, %v707_v21 }
  0x3a   : > { %s1329_s9 = sshll.u32 %s196_s27, 4  ;;  %s1336_s18 = sshll.u32 %s1667_s15, 8  ;;  %vm1217_vm2 = vcmask 392192  }
  0x3b   : > { %s1330_s4 = sshll.u32 %s200_s28, 3  ;;  %v284_v9 = vsub.f32 %v212_v4, %v283_v6  ;;  %v294_v10 = vsub.f32 %v215_v5, %v293_v7  ;;  %v1451_v24 = vpack.c.bf16 %v719_v23, %v716_v22  ;;  %v804_v25 = vsub.f32 %v706_v20, %v716_v22  ;;  %s198_s10 = scalar_lea.vmem [#allocation5], %s1329_s9 }
  0x3c   : > { %s205_s6 = scalar_lea.vmem %s1863_s1, %s1330_s4  ;;  %v811_v26 = vsub.f32 %v707_v21, %v719_v23  ;;  %s1235_s11 = sshll.u32 %s198_s10, 4  ;;  %s1809_s11 = int_to_ptr.vmem [resolvable:$true] %s1235_s11 }
  0x3d   : > { %v207_v0 = vld [vmem:[%s205_s6] sm:$0xff]  ;;  %v285_v12 = vand.u32 4294901760, %v284_v9  ;;  %v295_v13 = vand.u32 4294901760, %v294_v10  ;;  %1452 = vmatprep.subr.bf16.mxu1 %v1451_v24  ;;  %v805_v27 = vand.u32 4294901760, %v804_v25  ;;  %s1814_s23 = scalar_lea.hbm %s1865_s3, %s1336_s18  ;;  %s1816_s28 = scalar_lea.sflag [#allocation4], %s196_s27 }
  0x3e   : > { %v218_v3 = vand.u32 4294901760, %v207_v0  ;;  %v812_v28 = vand.u32 4294901760, %v811_v26  ;;  %1454 = vmatpush3.bf16.msra.mxu1 %v1451_v24  ;;  %v1459_v33 = vpack.c.bf16 %v811_v26, %v804_v25  ;;  %s1593_s4 = scalar_lea.vmem %s1809_s11, 256  ;;  %p1877_p10 = scmp.ne.s32.totalorder %s1870_s22, 0 }
  0x3f   : > { %v286_v15 = vsub.f32 %v284_v9, %v285_v12  ;;  %v296_v16 = vsub.f32 %v294_v10, %v295_v13  ;;  %v806_v29 = vsub.f32 %v804_v25, %v805_v27  ;;  %p1594_p8 = scmp.ne.s32.totalorder %s1809_s11, %s1593_s4  ;;  %s1680_s15 = smov [#allocation5]  }
  0x40   : > { %1379 = vmatprep.subr.mxu0 %v218_v3  ;;  %v305_v8 = vsub.f32 %v207_v0, %v218_v3  ;;  %v813_v30 = vsub.f32 %v811_v26, %v812_v28  ;;  %v1467_v35 = vpack.c.bf16 %v812_v28, %v805_v27  ;;  %s1597_s5 = sshll.u32 %s1680_s15, 4  ;;  %s1598_s5 = int_to_ptr.vmem [resolvable:$false] %s1597_s5 }
  0x41   : > { %1380 = vmatpush3.msra.mxu0 %v218_v3  ;;  %v287_v18 = vand.u32 4294901760, %v286_v15  ;;  %v297_v19 = vand.u32 4294901760, %v296_v16  ;;  %v807_v31 = vand.u32 4294901760, %v806_v29  ;;  %p1595_p11 = pnand %p1594_p8, %p1877_p10  ;;  %s1599_s30 = scalar_lea.vmem %s1598_s5, 512 }
  0x42   : > { %v306_v11 = vand.u32 4294901760, %v305_v8  ;;  %v814_v32 = vand.u32 4294901760, %v813_v30  ;;  %p1600_p1 = scmp.lt.s32.totalorder %s1809_s11, %s1598_s5  ;;  %p1601_p3 = scmp.lt.s32.totalorder %s1599_s30, %s1593_s4 }
  0x43   : > { %1381 = vmatprep.mubr.f32.mxu0 %v287_v18  ;;  %p1596_p13 = pneg %p1595_p11 }
  0x44   : > { %v307_v14 = vsub.f32 %v305_v8, %v306_v11  ;;  %1382 = vmatmul.mubr.f32.vlgmr.msra.gmra.mrb[0].mxu0 %v297_v19  ;;  %v1455_v34 = vpack.c.bf16 %v814_v32, %v807_v31  ;;  %p1602_p5 = por %p1601_p3, %p1600_p1 }
  0x45   : > { %1386 = vmatprep.mubr.f32.mxu0 %v283_v6 }
  0x46   : > { %v308_v17 = vand.u32 4294901760, %v307_v14  ;;  %1456 = vmatprep.subr.bf16.mxu1 %v1455_v34  ;;  %p1603_p6 = pnand %p1602_p5, %p1596_p13 }
  0x48   : > { %1384 = vmatprep.subr.mxu0 %v308_v17 }
  0x49   : > { %1385 = vmatpush3.msra.mxu0 %v308_v17 }
  0x4a   : > { %1389 = vmatprep.subr.mxu0 %v305_v8 }
  0x4c   : > { %1387 = vmatmul.mubr.f32.vlgmr.msra.gmra.mrb[0].mxu0 %v293_v7 }
  0x4d   : > { %1390 = vmatpush3.msra.mxu0 %v305_v8  ;;  %1391 = vmatprep.mubr.f32.mxu0 %v284_v9 }
  0x4e   : > { %1394 = vmatprep.subr.mxu0 %v218_v3 }
  0x54   : > { %1392 = vmatmul.mubr.f32.vlgmr.msra.gmra.mrb[0].mxu0 %v294_v10 }
  0x55   : > { %1395 = vmatpush3.msra.mxu0 %v218_v3  ;;  %1396 = vmatprep.mubr.f32.mxu0 %v285_v12 }
  0x56   : > { %1399 = vmatprep.subr.mxu0 %v306_v11 }
  0x5c   : > { %1397 = vmatmul.mubr.f32.vlgmr.msra.gmra.mrb[0].mxu0 %v295_v13 }
  0x5d   : > { %1400 = vmatpush3.msra.mxu0 %v306_v11  ;;  %1401 = vmatprep.mubr.f32.mxu0 %v283_v6 }
  0x5e   : > { %1404 = vmatprep.subr.mxu0 %v218_v3 }
  0x64   : > { %1402 = vmatmul.mubr.f32.vlgmr.msra.gmra.mrb[0].mxu0 %v293_v7 }
  0x65   : > { %1405 = vmatpush3.msra.mxu0 %v218_v3  ;;  %1406 = vmatprep.mubr.f32.mxu0 %v283_v6 }
  0x6c   : > { %1407 = vmatmul.mubr.f32.vlgmr.msra.gmra.mrb[0].mxu0 %v293_v7 }
 0x13f   : > { %v1408_v36 = vpop.f32.mrb[0].mxu0 }
 0x140   : > { %v713_v37 = vsel %vm708_vm1, %v1408_v36, 0  ;;  %v696_v38 = vpop.f32.mrb[1].mxu0 }
 0x141   : > { %v792_v39 = vand.u32 4294901760, %v713_v37  ;;  %v710_v40 = vsel %vm708_vm1, %v696_v38, 0 }
 0x142   : > { %v782_v41 = vand.u32 4294901760, %v710_v40 }
 0x143   : > { %v793_v42 = vsub.f32 %v713_v37, %v792_v39 }
 0x144   : > { %v783_v43 = vsub.f32 %v710_v40, %v782_v41 }
 0x145   : > { %v794_v44 = vand.u32 4294901760, %v793_v42 }
 0x146   : > { %v784_v45 = vand.u32 4294901760, %v783_v43 }
 0x147   : > { %v795_v46 = vsub.f32 %v793_v42, %v794_v44 }
 0x148   : > { %v785_v47 = vsub.f32 %v783_v43, %v784_v45 }
 0x149   : > { %v796_v49 = vand.u32 4294901760, %v795_v46 }
 0x14a   : > { %v786_v48 = vand.u32 4294901760, %v785_v47 }
 0x14c   : > { %1413 = vmatprep.mubr.f32.mxu1 %v786_v48 }
 0x14d   : > { %1414 = vmatmul.mubr.f32.vlgmr.msra.gmra.mrb[0].mxu1 %v796_v49 }
 0x14e   : > { %1458 = vmatpush3.bf16.msra.mxu1 %v1455_v34  ;;  %1420 = vmatprep.mubr.f32.mxu1 %v782_v41 }
 0x14f   : > { %1460 = vmatprep.subr.bf16.mxu1 %v1459_v33 }
 0x155   : > { %1421 = vmatmul.mubr.f32.vlgmr.msra.gmra.mrb[0].mxu1 %v792_v39 }
 0x156   : > { %1462 = vmatpush3.bf16.msra.mxu1 %v1459_v33  ;;  %1427 = vmatprep.mubr.f32.mxu1 %v783_v43 }
 0x157   : > { %1464 = vmatprep.subr.bf16.mxu1 %v1451_v24 }
 0x15d   : > { %1428 = vmatmul.mubr.f32.vlgmr.msra.gmra.mrb[0].mxu1 %v793_v42 }
 0x15e   : > { %1466 = vmatpush3.bf16.msra.mxu1 %v1451_v24  ;;  %1434 = vmatprep.mubr.f32.mxu1 %v784_v45 }
 0x15f   : > { %1468 = vmatprep.subr.bf16.mxu1 %v1467_v35 }
 0x165   : > { %1435 = vmatmul.mubr.f32.vlgmr.msra.gmra.mrb[0].mxu1 %v794_v44 }
 0x166   : > { %1470 = vmatpush3.bf16.msra.mxu1 %v1467_v35  ;;  %1441 = vmatprep.mubr.f32.mxu1 %v782_v41 }
 0x167   : > { %1472 = vmatprep.subr.bf16.mxu1 %v1451_v24 }
 0x16d   : > { %1442 = vmatmul.mubr.f32.vlgmr.msra.gmra.mrb[0].mxu1 %v792_v39 }
 0x16e   : > { %1474 = vmatpush3.bf16.msra.mxu1 %v1451_v24  ;;  %1448 = vmatprep.mubr.f32.mxu1 %v782_v41 }
 0x175   : > { %1449 = vmatmul.mubr.f32.vlgmr.msra.gmra.mrb[0].mxu1 %v792_v39 }
 0x248   : > { %v1450_v50 = vpop.f32.mrb[0].mxu1 }
 0x249   : > { %1219 = vst.msk [vmem:[%s198_s10 + $0x8] sm:$0xff] %vm1217_vm2, %v1450_v50  ;;  %v1207_v51 = vpop.f32.mrb[1].mxu1 }
 0x24a   : > { %1218 = vst.msk [vmem:[%s198_s10] sm:$0xff] %vm1217_vm2, %v1207_v51 }
 0x24b   : > { %1606 = shalt.err (!%p1603_p6)
}
 0x24c   : > { %s1607_s6 = scalar_lea.hbm %s1814_s23, 256  ;;  %s1611_s7 = scalar_lea.hbm %s1865_s3, 512 }
 0x24d   : > { %p1608_p7 = scmp.ne.s32.totalorder %s1814_s23, %s1607_s6  ;;  %p1612_p0 = scmp.lt.u32.totalorder %s1814_s23, %s1865_s3 }
 0x24e   : > { %p1613_p2 = scmp.lt.u32.totalorder %s1611_s7, %s1607_s6  ;;  %p1615_p8 = scmp.lt.u32.totalorder %s1607_s6, %s1814_s23 }
 0x24f   : > { %p1609_p9 = pnand %p1608_p7, %p1877_p10 }
 0x250   : > { %p1614_p4 = por %p1613_p2, %p1612_p0 }
 0x251   : > { %p1610_p12 = pneg %p1609_p9 }
 0x252   : > { %p1616_p11 = por %p1615_p8, %p1614_p4 }
 0x254   : > { %p1617_p13 = pnand %p1616_p11, %p1610_p12 }
 0x256   : > { %1620 = shalt.err (!%p1617_p13)
}
 0x257   : > { %s1681_s9 = smov 128   ;;  %s1682_s10 = smov 8  }
 0x258   : > { %1499 = dma.vmem_to_hbm [thread:$0]  (%p1877_p10), %s1809_s11, 256, %s1814_s23, %s1816_s28, %s1681_s9, %s1681_s9, %s1682_s10  }
 0x259 PF: > { %p1511_p1 = scmp.ge.s32.totalorder %s1675_s17, 2  ;;  %s1250_s18 = sand.u32 1, %s1655_s12  }
 0x25a   : > { %p1878_p3 = scmp.ne.s32.totalorder %s1871_s24, 0  ;;  %s1251_s19 = scalar_lea.sflag [#allocation4], %s1250_s18 }
 0x25c   : > { %p1506_p5 = pnand %p1511_p1, %p1878_p3 }
 0x25e   : > { %1650 = dma.done.wait (!%p1506_p5), %s1251_s19, 256  }
 0x25f   : > { %1652 = vsyncadd (!%p1506_p5), %s1251_s19, 4294967040  ;;  %s17_s17 = sadd.s32 1, %s1675_s17   ;;  %s1879_s12 = smov %s1659_s13 }
 0x260   : > { %p14_p6 = scmp.ge.s32.totalorder %s17_s17, 4   ;;  %s1880_s13 = smov %s1663_s14 }
 0x261   : > { %s1881_s14 = smov %s1756_s25  ;;  %s1882_s15 = smov %s1671_s16 }
 0x262   : > { %s1883_s16 = smov %s1885_s20  ;;  %16 = sbr.rel (!%p14_p6) target bundleno = 5 (0x5), region = 72 }
 0x269   :  { %1256 = vsyncpa [#allocation3], 1 }
 0x26a   :  { %1258 = vsyncpa [#allocation3 + $0x1], 1 }
 0x26b   :  { %1259 = vsyncpa [#allocation4], 1 }
 0x26c   :  { %1261 = vsyncpa [#allocation4 + $0x1], 1 }

// kernel: tpu_custom_call.1
= control target key start
LH: loop header
LB: loop body
LE: loop exit
PB: predicated region body
PF: predicated region fallthrough
CT: control target
= control target key end

     0   :  { %s3729_s12 = smov 0   ;;  %s3731_s13 = smov 0   ;;  %s4532_s0 = inlined_call_operand.vmem [shape: f32[128,64], index: 0, kind: input, shape index: {}]   ;;  %s4533_s1 = inlined_call_operand.vmem [shape: f32[128,16], index: 1, kind: input, shape index: {}]   ;;  %s4534_s2 = inlined_call_operand.vmem [shape: f32[16,48], index: 2, kind: input, shape index: {}]   ;;  %s4535_s3 = inlined_call_operand.vmem [shape: f32[256,48], index: 3, kind: output, shape index: {}]  }
   0x1   :  { %s3733_s14 = smov 0  }
   0x2 LB: > { %s25_s15 = sadd.s32 1, %s3703_s13  ;;  %p2714_p0 = scmp.ge.s32.totalorder %s3707_s14, 1  ;;  %s3707_s14 = sphi %s3733_s14, %s13_s14   ;;  %s3703_s13 = sphi %s3731_s13, %s4571_s13   ;;  %s3699_s12 = sphi %s3729_s12, %s4570_s12  }
   0x3   : > { %p27_p1 = scmp.ge.s32.totalorder %s25_s15, 2  ;;  %p157_p2 = scmp.lt.s32.totalorder %s3707_s14, 3 }
   0x5   : > { %s4573_s15 = smov (%p27_p1, %s25_s15), 0  ;;  %p158_p3 = pnand %p2714_p0, %p157_p2 }
   0x6   : > { %s2715_s16 = sshll.u32 (!%p158_p3), %s3699_s12, 3  ;;  %v213_v0 = vld [vmem:[%s4532_s0] sm:$0xff] (!%p158_p3)  ;;  %vm229_vm0 = vcmask (!%p158_p3), 523264   ;;  %v214_v1 = vld [vmem:[%s4532_s0 + $0x8] sm:$0xff] (!%p158_p3)  ;;  %v215_v2 = vld [vmem:[%s4532_s0 + $0x10] sm:$0xff] (!%p158_p3)  ;;  %vm1462_vm1 = vcmask (!%p158_p3), 130048  }
   0x7   : > { %161 = sbr.rel (%p158_p3) target bundleno = 825 (0x339), region = 32  ;;  %p188_p4 = scmp.lt.s32.totalorder (!%p158_p3), %s2715_s16, 15  ;;  %v231_v3 = vsel (!%p158_p3), %vm229_vm0, %v213_v0, 0  ;;  %v234_v4 = vsel (!%p158_p3), %vm229_vm0, %v214_v1, 0  ;;  %v216_v5 = vld [vmem:[%s4532_s0 + $0x18] sm:$0xff] (!%p158_p3)  ;;  %v237_v7 = vsel (!%p158_p3), %vm229_vm0, %v215_v2, 0 }
   0x8   : > { %v3764_v6 = vand.u32 (!%p158_p3), 4294901760, %v231_v3  ;;  %v3767_v8 = vand.u32 (!%p158_p3), 4294901760, %v234_v4  ;;  %v217_v9 = vld [vmem:[%s4532_s0 + $0x20] sm:$0xff] (!%p158_p3)  ;;  %v240_v11 = vsel (!%p158_p3), %vm229_vm0, %v216_v5, 0  ;;  %v218_v12 = vld [vmem:[%s4532_s0 + $0x28] sm:$0xff] (!%p158_p3)  ;;  %v3779_v13 = vand.u32 (!%p158_p3), 4294901760, %v237_v7 }
   0x9   : > { %v243_v15 = vsel (!%p158_p3), %vm229_vm0, %v217_v9, 0  ;;  %v219_v16 = vld [vmem:[%s4532_s0 + $0x30] sm:$0xff] (!%p158_p3)  ;;  %v3792_v21 = vand.u32 (!%p158_p3), 4294901760, %v240_v11  ;;  %v246_v22 = vsel (!%p158_p3), %vm229_vm0, %v218_v12, 0  ;;  %v220_v34 = vld [vmem:[%s4532_s0 + $0x38] sm:$0xff] (!%p158_p3)  ;;  %v221_v61 = vld [vmem:[%s4532_s0 + $0x40] sm:$0xff] (!%p158_p3) }
   0xa   : > { %v3773_v10 = vsub.f32 (!%p158_p3), %v231_v3, %v3764_v6  ;;  %v3790_v20 = vsub.f32 (!%p158_p3), %v234_v4, %v3767_v8  ;;  %v3803_v31 = vsub.f32 (!%p158_p3), %v237_v7, %v3779_v13  ;;  %v3805_v32 = vand.u32 (!%p158_p3), 4294901760, %v243_v15  ;;  %v222_v2 = vld [vmem:[%s4532_s0 + $0x48] sm:$0xff] (!%p158_p3)  ;;  %s2717_s7 = sshll.u32 (!%p158_p3), %s3699_s12, 4 }
   0xb   : > { %v249_v33 = vsel (!%p158_p3), %vm229_vm0, %v219_v16, 0  ;;  %v3824_v43 = vsub.f32 (!%p158_p3), %v240_v11, %v3792_v21  ;;  %v3826_v44 = vand.u32 (!%p158_p3), 4294901760, %v246_v22  ;;  %v252_v48 = vsel (!%p158_p3), %vm229_vm0, %v220_v34, 0  ;;  %v224_v34 = vld [vmem:[%s4532_s0 + $0x58] sm:$0xff] (!%p158_p3)  ;;  %p197_p5 = scmp.lt.s32.totalorder (!%p158_p3), %s2717_s7, 31 }
   0xc   : > { %v4541_v14 = vand.u32 (!%p158_p3), 4294901760, %v3773_v10  ;;  %v4540_v45 = vand.u32 (!%p158_p3), 4294901760, %v3790_v20  ;;  %v3832_v47 = vand.u32 (!%p158_p3), 4294901760, %v249_v33  ;;  %v4539_v55 = vand.u32 (!%p158_p3), 4294901760, %v3803_v31 }
   0xd   : > { %v4537_v58 = vand.u32 (!%p158_p3), 4294901760, %v3824_v43  ;;  %v3853_v59 = vsub.f32 (!%p158_p3), %v243_v15, %v3805_v32  ;;  %v3866_v0 = vsub.f32 (!%p158_p3), %v246_v22, %v3826_v44  ;;  %v3882_v5 = vand.u32 (!%p158_p3), 4294901760, %v252_v48 }
   0xe   : > { %s4575_s16 = smov (!%p188_p4, %s2715_s16), 15  ;;  %v354_v29 = vsub.f32 %v3773_v10, %v4541_v14  ;;  %v364_v62 = vsub.f32 %v3790_v20, %v4540_v45  ;;  %v255_v12 = vsel %vm229_vm0, %v221_v61, 0  ;;  %v374_v15 = vsub.f32 %v3803_v31, %v4539_v55  ;;  %s4577_s7 = smov (!%p197_p5, %s2717_s7), 31 }
   0xf   : > { %s2716_s29 = sshll.u32 %s4575_s16, 3  ;;  %v3893_v16 = vsub.f32 %v249_v33, %v3832_v47  ;;  %s2718_s8 = sshll.u32 %s4577_s7, 3  ;;  %vm2615_vm2 = vcmask 392192  }
  0x10   : > { %s194_s5 = scalar_lea.vmem %s4533_s1, %s2716_s29  ;;  %v355_v40 = vand.u32 4294901760, %v354_v29  ;;  %v365_v22 = vand.u32 4294901760, %v364_v62  ;;  %v3908_v29 = vsub.f32 %v252_v48, %v3882_v5  ;;  %s4489_s11 = scalar_lea.vmem %s4535_s3, %s2718_s8 }
  0x11   : > { %v205_v17 = vld [vmem:[%s194_s5] sm:$0xff]  ;;  %v206_v18 = vld [vmem:[%s194_s5 + $0x8] sm:$0xff]  ;;  %v207_v19 = vld [vmem:[%s194_s5 + $0x10] sm:$0xff] }
  0x12   : > { %v279_v23 = vand.u32 4294901760, %v205_v17  ;;  %v282_v24 = vand.u32 4294901760, %v206_v18  ;;  %v208_v25 = vld [vmem:[%s194_s5 + $0x18] sm:$0xff]  ;;  %v285_v26 = vand.u32 4294901760, %v207_v19  ;;  %v3795_v27 = vld [vmem:[%s194_s5 + $0x20] sm:$0xff]  ;;  %v3797_v28 = vld [vmem:[%s194_s5 + $0x28] sm:$0xff]  ;;  %2989 = vmatprep.mubr.f32.mxu0 %v355_v40 }
  0x13   : > { %v288_v30 = vand.u32 4294901760, %v208_v25  ;;  %v291_v36 = vand.u32 4294901760, %v3795_v27  ;;  %v294_v37 = vand.u32 4294901760, %v3797_v28  ;;  %v3815_v38 = vld [vmem:[%s194_s5 + $0x30] sm:$0xff]  ;;  %v3817_v39 = vld [vmem:[%s194_s5 + $0x38] sm:$0xff] }
  0x14   : > { %v3811_v35 = vpack.c.bf16 %v282_v24, %v279_v23  ;;  %v3821_v42 = vsub.f32 %v205_v17, %v279_v23  ;;  %v3830_v46 = vsub.f32 %v206_v18, %v282_v24  ;;  %v297_v49 = vand.u32 4294901760, %v3815_v38 }
  0x15   : > { %v3819_v41 = vpack.c.bf16 %v288_v30, %v285_v26  ;;  %v300_v50 = vand.u32 4294901760, %v3817_v39  ;;  %v3839_v52 = vsub.f32 %v207_v19, %v285_v26  ;;  %v3842_v53 = vpack.c.bf16 %v294_v37, %v291_v36  ;;  %v223_v19 = vld [vmem:[%s4532_s0 + $0x50] sm:$0xff] }
  0x16   : > { %3382 = vmatprep.subr.bf16.mxu0 %v3811_v35  ;;  %v514_v51 = vand.u32 4294901760, %v3821_v42  ;;  %v4549_v54 = vand.u32 4294901760, %v3830_v46  ;;  %v3846_v56 = vsub.f32 %v208_v25, %v288_v30  ;;  %v3895_v17 = vand.u32 4294901760, %v255_v12 }
  0x17   : > { %3384 = vmatpush3.bf16.msra.mxu0 %v3811_v35  ;;  %v4548_v60 = vand.u32 4294901760, %v3839_v52  ;;  %v3877_v3 = vpack.c.bf16 %v300_v50, %v297_v49  ;;  %v258_v18 = vsel %vm229_vm0, %v222_v2, 0  ;;  %v384_v23 = vsub.f32 %v3824_v43, %v4537_v58 }
  0x18   : > { %3386 = vmatprep.subr.bf16.mxu0 %v3819_v41  ;;  %v515_v57 = vsub.f32 %v3821_v42, %v514_v51  ;;  %v522_v63 = vsub.f32 %v3830_v46, %v4549_v54  ;;  %v4547_v1 = vand.u32 4294901760, %v3846_v56  ;;  %v4536_v24 = vand.u32 4294901760, %v3853_v59 }
  0x19   : > { %v529_v4 = vsub.f32 %v3839_v52, %v4548_v60  ;;  %v4538_v25 = vand.u32 4294901760, %v3866_v0  ;;  %v3911_v30 = vsub.f32 %v3795_v27, %v291_v36  ;;  %v3914_v33 = vsub.f32 %v3797_v28, %v294_v37  ;;  %v225_v27 = vld [vmem:[%s4532_s0 + $0x60] sm:$0xff] }
  0x1a   : > { %v516_v7 = vand.u32 4294901760, %v515_v57  ;;  %v523_v9 = vand.u32 4294901760, %v522_v63  ;;  %v536_v11 = vsub.f32 %v3846_v56, %v4547_v1  ;;  %v3920_v61 = vand.u32 4294901760, %v258_v18 }
  0x1b   : > { %3388 = vmatpush3.bf16.msra.mxu0 %v3819_v41  ;;  %v530_v26 = vand.u32 4294901760, %v529_v4  ;;  %v261_v62 = vsel %vm229_vm0, %v223_v19, 0  ;;  %v375_v36 = vand.u32 4294901760, %v374_v15  ;;  %v3927_v28 = vsub.f32 %v255_v12, %v3895_v17 }
  0x1c   : > { %3390 = vmatprep.subr.bf16.mxu0 %v3842_v53  ;;  %v3397_v40 = vpack.c.bf16 %v523_v9, %v516_v7  ;;  %v537_v57 = vand.u32 4294901760, %v536_v11  ;;  %v4542_v37 = vand.u32 4294901760, %v3911_v30  ;;  %v4543_v48 = vand.u32 4294901760, %v3914_v33 }
  0x1d   : > { %v394_v63 = vsub.f32 %v3853_v59, %v4536_v24  ;;  %v4546_v2 = vand.u32 4294901760, %v3893_v16  ;;  %v3935_v4 = vand.u32 4294901760, %v261_v62  ;;  %v264_v7 = vsel %vm229_vm0, %v224_v34, 0 }
  0x1e   : > { %v404_v9 = vsub.f32 %v3866_v0, %v4538_v25  ;;  %v543_v11 = vsub.f32 %v3911_v30, %v4542_v37  ;;  %v550_v12 = vsub.f32 %v3914_v33, %v4543_v48  ;;  %v267_v15 = vsel %vm229_vm0, %v225_v27, 0  ;;  %v226_v25 = vld [vmem:[%s4532_s0 + $0x68] sm:$0xff] }
  0x1f   : > { %3392 = vmatpush3.bf16.msra.mxu0 %v3842_v53  ;;  %v385_v19 = vand.u32 4294901760, %v384_v23  ;;  %v3401_v24 = vpack.c.bf16 %v537_v57, %v530_v26  ;;  %v4545_v34 = vand.u32 4294901760, %v3908_v29  ;;  %v3951_v58 = vsub.f32 %v258_v18, %v3920_v61  ;;  %v227_v23 = vld [vmem:[%s4532_s0 + $0x70] sm:$0xff] }
  0x20   : > { %3394 = vmatprep.subr.bf16.mxu0 %v3877_v3  ;;  %v4544_v55 = vand.u32 4294901760, %v3927_v28  ;;  %v544_v45 = vand.u32 4294901760, %v543_v11  ;;  %v551_v14 = vand.u32 4294901760, %v550_v12  ;;  %v3957_v37 = vand.u32 4294901760, %v264_v7 }
  0x21   : > { %v395_v26 = vand.u32 4294901760, %v394_v63  ;;  %v414_v18 = vsub.f32 %v3893_v16, %v4546_v2  ;;  %v3966_v57 = vsub.f32 %v261_v62, %v3935_v4  ;;  %v3968_v27 = vand.u32 4294901760, %v267_v15 }
  0x22   : > { %v405_v11 = vand.u32 4294901760, %v404_v9  ;;  %v270_v12 = vsel %vm229_vm0, %v226_v25, 0  ;;  %v3974_v48 = vsub.f32 %v3815_v38, %v297_v49  ;;  %v424_v62 = vsub.f32 %v3908_v29, %v4545_v34  ;;  %v228_v38 = vld [vmem:[%s4532_s0 + $0x78] sm:$0xff] }
  0x23   : > { %3396 = vmatpush3.bf16.msra.mxu0 %v3877_v3  ;;  %v273_v25 = vsel %vm229_vm0, %v227_v23, 0  ;;  %v434_v49 = vsub.f32 %v3927_v28, %v4544_v55  ;;  %v415_v9 = vand.u32 4294901760, %v414_v18  ;;  %v4001_v23 = vand.u32 4294901760, %v270_v12 }
  0x24   : > { %3398 = vmatprep.subr.bf16.mxu0 %v3397_v40  ;;  %v4005_v34 = vand.u32 4294901760, %v273_v25  ;;  %v276_v2 = vsel %vm229_vm0, %v228_v38, 0  ;;  %v425_v1 = vand.u32 4294901760, %v424_v62  ;;  %v4552_v62 = vand.u32 4294901760, %v3830_v46 }
  0x25   : > { %v4016_v54 = vsub.f32 %v270_v12, %v4001_v23  ;;  %v4018_v38 = vand.u32 4294901760, %v276_v2  ;;  %v4554_v12 = vand.u32 4294901760, %v3846_v56  ;;  %v3413_v18 = vpack.c.bf16 %v3830_v46, %v3821_v42 }
  0x26   : > { %2990 = vmatmul.mubr.f32.vlgmr.msra.gmra.mrb[0].mxu0 %v365_v22  ;;  %v3979_v22 = vsub.f32 %v3817_v39, %v300_v50  ;;  %v3993_v39 = vsub.f32 %v264_v7, %v3957_v37  ;;  %v556_v50 = vand.u32 4294901760, %v3974_v48 }
  0x27   : > { %3400 = vmatpush3.bf16.msra.mxu0 %v3397_v40  ;;  %2992 = vmatprep.mubr.f32.mxu0 %v375_v36  ;;  %v4550_v40 = vand.u32 4294901760, %v3951_v58  ;;  %v3405_v36 = vpack.c.bf16 %v551_v14, %v544_v45  ;;  %v4551_v14 = vand.u32 4294901760, %v3966_v57  ;;  %v3999_v45 = vsub.f32 %v267_v15, %v3968_v27 }
  0x28   : > { %3402 = vmatprep.subr.bf16.mxu0 %v3401_v24  ;;  %v563_v63 = vand.u32 4294901760, %v3979_v22  ;;  %v557_v55 = vsub.f32 %v3974_v48, %v556_v50  ;;  %v435_v15 = vand.u32 4294901760, %v434_v49  ;;  %v4028_v49 = vsub.f32 %v273_v25, %v4005_v34 }
  0x29   : > { %v4557_v25 = vand.u32 4294901760, %v3993_v39 }
  0x2a   : > { %2993 = vmatmul.mubr.f32.gmra.mrb[2].mxu0 %v385_v19  ;;  %v564_v7 = vsub.f32 %v3979_v22, %v563_v63  ;;  %v444_v19 = vsub.f32 %v3951_v58, %v4550_v40  ;;  %v558_v60 = vand.u32 4294901760, %v557_v55  ;;  %v4024_v40 = vpack.c.bf16 %v4552_v62, %v514_v51 }
  0x2b   : > { %2995 = vmatprep.mubr.f32.mxu0 %v395_v26  ;;  %3404 = vmatpush3.bf16.msra.mxu0 %v3401_v24  ;;  %v454_v24 = vsub.f32 %v3966_v57, %v4551_v14  ;;  %v473_v55 = vand.u32 4294901760, %v3999_v45  ;;  %v4555_v51 = vand.u32 4294901760, %v3911_v30  ;;  %v4044_v62 = vpack.c.bf16 %v563_v63, %v556_v50 }
  0x2c   : > { %3406 = vmatprep.subr.bf16.mxu0 %v3405_v36  ;;  %v565_v26 = vand.u32 4294901760, %v564_v7  ;;  %v4553_v7 = vand.u32 4294901760, %v3839_v52  ;;  %v493_v50 = vand.u32 4294901760, %v4028_v49 }
  0x2d   : > { %v455_v42 = vand.u32 4294901760, %v454_v24  ;;  %v474_v46 = vsub.f32 %v3999_v45, %v473_v55 }
  0x2e   : > { %2996 = vmatmul.mubr.f32.gmra.mrb[4].mxu0 %v405_v11  ;;  %v3409_v11 = vpack.c.bf16 %v565_v26, %v558_v60  ;;  %v4034_v14 = vpack.c.bf16 %v4554_v12, %v4553_v7  ;;  %v445_v60 = vand.u32 4294901760, %v444_v19  ;;  %v464_v26 = vsub.f32 %v3993_v39, %v4557_v25 }
  0x2f   : > { %2998 = vmatprep.mubr.f32.mxu0 %v415_v9  ;;  %3408 = vmatpush3.bf16.msra.mxu0 %v3405_v36  ;;  %v4556_v9 = vand.u32 4294901760, %v3914_v33  ;;  %v483_v7 = vand.u32 4294901760, %v4016_v54  ;;  %v4051_v12 = vsub.f32 %v276_v2, %v4018_v38  ;;  %v475_v2 = vand.u32 4294901760, %v474_v46 }
  0x30   : > { %3410 = vmatprep.subr.bf16.mxu0 %v3409_v11  ;;  %v3421_v25 = vpack.c.bf16 %v3914_v33, %v3911_v30  ;;  %v4560_v30 = vand.u32 4294901760, %v3803_v31  ;;  %v4561_v33 = vand.u32 4294901760, %v3824_v43 }
  0x31   : > { %v4042_v36 = vpack.c.bf16 %v4556_v9, %v4555_v51  ;;  %v484_v63 = vsub.f32 %v4016_v54, %v483_v7  ;;  %v503_v19 = vand.u32 4294901760, %v4051_v12 }
  0x32   : > { %2999 = vmatmul.mubr.f32.gmra.mrb[6].mxu0 %v425_v1  ;;  %v465_v1 = vand.u32 4294901760, %v464_v26  ;;  %v3425_v26 = vpack.c.bf16 %v3979_v22, %v3974_v48  ;;  %v4562_v48 = vand.u32 4294901760, %v3853_v59 }
  0x33   : > { %3001 = vmatprep.mubr.f32.mxu0 %v435_v15  ;;  %3412 = vmatpush3.bf16.msra.mxu0 %v3409_v11  ;;  %v494_v15 = vsub.f32 %v4028_v49, %v493_v50  ;;  %v485_v24 = vand.u32 4294901760, %v484_v63  ;;  %v504_v11 = vsub.f32 %v4051_v12, %v503_v19 }
  0x34   : > { %3414 = vmatprep.subr.bf16.mxu0 %v3413_v18 }
  0x35   : > { %v495_v51 = vand.u32 4294901760, %v494_v15  ;;  %v505_v9 = vand.u32 4294901760, %v504_v11 }
  0x36   : > { %3002 = vmatmul.mubr.f32.gmra.mrb[8].mxu0 %v445_v60  ;;  %v3417_v60 = vpack.c.bf16 %v3846_v56, %v3839_v52  ;;  %v4558_v52 = vand.u32 4294901760, %v3773_v10  ;;  %v4559_v56 = vand.u32 4294901760, %v3790_v20 }
  0x37   : > { %3004 = vmatprep.mubr.f32.mxu0 %v455_v42 }
  0x3a   : > { %3005 = vmatmul.mubr.f32.gmra.mrb[10].mxu0 %v465_v1 }
  0x3b   : > { %3007 = vmatprep.mubr.f32.mxu0 %v475_v2 }
  0x3e   : > { %3008 = vmatmul.mubr.f32.gmra.mrb[12].mxu0 %v485_v24 }
  0x3f   : > { %3010 = vmatprep.mubr.f32.mxu0 %v495_v51 }
  0x42   : > { %3011 = vmatmul.mubr.f32.gmra.mrb[14].mxu0 %v505_v9 }
  0x43   : > { %3029 = vmatprep.mubr.f32.mxu0 %v3764_v6 }
  0x46   : > { %3030 = vmatmul.mubr.f32.vlgmr.msra.gmra.mrb[0].mxu0 %v3767_v8 }
  0x47   : > { %3416 = vmatpush3.bf16.msra.mxu0 %v3413_v18  ;;  %3032 = vmatprep.mubr.f32.mxu0 %v3779_v13 }
  0x48   : > { %3418 = vmatprep.subr.bf16.mxu0 %v3417_v60 }
  0x4a   : > { %3033 = vmatmul.mubr.f32.gmra.mrb[2].mxu0 %v3792_v21 }
  0x4b   : > { %3035 = vmatprep.mubr.f32.mxu0 %v3805_v32  ;;  %3420 = vmatpush3.bf16.msra.mxu0 %v3417_v60 }
  0x4c   : > { %3422 = vmatprep.subr.bf16.mxu0 %v3421_v25 }
  0x4e   : > { %3036 = vmatmul.mubr.f32.gmra.mrb[4].mxu0 %v3826_v44 }
  0x4f   : > { %3038 = vmatprep.mubr.f32.mxu0 %v3832_v47  ;;  %3424 = vmatpush3.bf16.msra.mxu0 %v3421_v25 }
  0x50   : > { %3426 = vmatprep.subr.bf16.mxu0 %v3425_v26 }
  0x52   : > { %3039 = vmatmul.mubr.f32.gmra.mrb[6].mxu0 %v3882_v5 }
  0x53   : > { %3041 = vmatprep.mubr.f32.mxu0 %v3895_v17  ;;  %3428 = vmatpush3.bf16.msra.mxu0 %v3425_v26 }
  0x54   : > { %3430 = vmatprep.subr.bf16.mxu0 %v3811_v35 }
  0x56   : > { %3042 = vmatmul.mubr.f32.gmra.mrb[8].mxu0 %v3920_v61 }
  0x57   : > { %3044 = vmatprep.mubr.f32.mxu0 %v3935_v4 }
  0x5a   : > { %3045 = vmatmul.mubr.f32.gmra.mrb[10].mxu0 %v3957_v37 }
  0x5b   : > { %3047 = vmatprep.mubr.f32.mxu0 %v3968_v27 }
  0x5e   : > { %3048 = vmatmul.mubr.f32.gmra.mrb[12].mxu0 %v4001_v23 }
  0x5f   : > { %3050 = vmatprep.mubr.f32.mxu0 %v4005_v34 }
  0x62   : > { %3051 = vmatmul.mubr.f32.gmra.mrb[14].mxu0 %v4018_v38 }
  0x63   : > { %3069 = vmatprep.mubr.f32.mxu0 %v3773_v10  ;;  %v4563_v10 = vand.u32 4294901760, %v3866_v0 }
  0x66   : > { %3070 = vmatmul.mubr.f32.vlgmr.msra.gmra.mrb[0].mxu0 %v3790_v20  ;;  %v4564_v20 = vand.u32 4294901760, %v3893_v16 }
  0x67   : > { %3432 = vmatpush3.bf16.msra.mxu0 %v3811_v35  ;;  %3072 = vmatprep.mubr.f32.mxu0 %v3803_v31  ;;  %v4565_v31 = vand.u32 4294901760, %v3908_v29 }
  0x68   : > { %3434 = vmatprep.subr.bf16.mxu0 %v3819_v41 }
  0x6a   : > { %3073 = vmatmul.mubr.f32.gmra.mrb[2].mxu0 %v3824_v43  ;;  %v4566_v43 = vand.u32 4294901760, %v3927_v28 }
  0x6b   : > { %3075 = vmatprep.mubr.f32.mxu0 %v3853_v59  ;;  %3436 = vmatpush3.bf16.msra.mxu0 %v3819_v41  ;;  %v4567_v59 = vand.u32 4294901760, %v3951_v58 }
  0x6c   : > { %3438 = vmatprep.subr.bf16.mxu0 %v3842_v53 }
  0x6e   : > { %3076 = vmatmul.mubr.f32.gmra.mrb[4].mxu0 %v3866_v0  ;;  %v4568_v0 = vand.u32 4294901760, %v3966_v57 }
  0x6f   : > { %3078 = vmatprep.mubr.f32.mxu0 %v3893_v16  ;;  %3440 = vmatpush3.bf16.msra.mxu0 %v3842_v53  ;;  %v4569_v16 = vand.u32 4294901760, %v3993_v39 }
  0x70   : > { %3442 = vmatprep.subr.bf16.mxu0 %v3877_v3 }
  0x72   : > { %3079 = vmatmul.mubr.f32.gmra.mrb[6].mxu0 %v3908_v29 }
  0x73   : > { %3081 = vmatprep.mubr.f32.mxu0 %v3927_v28  ;;  %3444 = vmatpush3.bf16.msra.mxu0 %v3877_v3 }
  0x74   : > { %3446 = vmatprep.subr.bf16.mxu0 %v4024_v40 }
  0x76   : > { %3082 = vmatmul.mubr.f32.gmra.mrb[8].mxu0 %v3951_v58 }
  0x77   : > { %3084 = vmatprep.mubr.f32.mxu0 %v3966_v57 }
  0x7a   : > { %3085 = vmatmul.mubr.f32.gmra.mrb[10].mxu0 %v3993_v39 }
  0x7b   : > { %3087 = vmatprep.mubr.f32.mxu0 %v3999_v45 }
  0x7e   : > { %3088 = vmatmul.mubr.f32.gmra.mrb[12].mxu0 %v4016_v54 }
  0x7f   : > { %3090 = vmatprep.mubr.f32.mxu0 %v4028_v49 }
  0x82   : > { %3091 = vmatmul.mubr.f32.gmra.mrb[14].mxu0 %v4051_v12 }
  0x83   : > { %3109 = vmatprep.mubr.f32.mxu0 %v4558_v52 }
  0x86   : > { %3110 = vmatmul.mubr.f32.vlgmr.msra.gmra.mrb[0].mxu0 %v4559_v56 }
  0x87   : > { %3448 = vmatpush3.bf16.msra.mxu0 %v4024_v40  ;;  %3112 = vmatprep.mubr.f32.mxu0 %v4560_v30 }
  0x88   : > { %3450 = vmatprep.subr.bf16.mxu0 %v4034_v14 }
  0x8a   : > { %3113 = vmatmul.mubr.f32.gmra.mrb[2].mxu0 %v4561_v33 }
  0x8b   : > { %3115 = vmatprep.mubr.f32.mxu0 %v4562_v48  ;;  %3452 = vmatpush3.bf16.msra.mxu0 %v4034_v14 }
  0x8c   : > { %3454 = vmatprep.subr.bf16.mxu0 %v4042_v36 }
  0x8e   : > { %3116 = vmatmul.mubr.f32.gmra.mrb[4].mxu0 %v4563_v10 }
  0x8f   : > { %3118 = vmatprep.mubr.f32.mxu0 %v4564_v20  ;;  %3456 = vmatpush3.bf16.msra.mxu0 %v4042_v36 }
  0x90   : > { %3458 = vmatprep.subr.bf16.mxu0 %v4044_v62 }
  0x92   : > { %3119 = vmatmul.mubr.f32.gmra.mrb[6].mxu0 %v4565_v31 }
  0x93   : > { %3121 = vmatprep.mubr.f32.mxu0 %v4566_v43  ;;  %3460 = vmatpush3.bf16.msra.mxu0 %v4044_v62 }
  0x94   : > { %3462 = vmatprep.subr.bf16.mxu0 %v3811_v35 }
  0x96   : > { %3122 = vmatmul.mubr.f32.gmra.mrb[8].mxu0 %v4567_v59 }
  0x97   : > { %3124 = vmatprep.mubr.f32.mxu0 %v4568_v0 }
  0x9a   : > { %3125 = vmatmul.mubr.f32.gmra.mrb[10].mxu0 %v4569_v16 }
  0x9b   : > { %3127 = vmatprep.mubr.f32.mxu0 %v473_v55 }
  0x9e   : > { %3128 = vmatmul.mubr.f32.gmra.mrb[12].mxu0 %v483_v7 }
  0x9f   : > { %3130 = vmatprep.mubr.f32.mxu0 %v493_v50 }
  0xa2   : > { %3131 = vmatmul.mubr.f32.gmra.mrb[14].mxu0 %v503_v19 }
  0xa3   : > { %3149 = vmatprep.mubr.f32.mxu0 %v3764_v6 }
  0xa6   : > { %3150 = vmatmul.mubr.f32.vlgmr.msra.gmra.mrb[0].mxu0 %v3767_v8 }
  0xa7   : > { %3464 = vmatpush3.bf16.msra.mxu0 %v3811_v35  ;;  %3152 = vmatprep.mubr.f32.mxu0 %v3779_v13 }
  0xa8   : > { %3466 = vmatprep.subr.bf16.mxu0 %v3819_v41 }
  0xaa   : > { %3153 = vmatmul.mubr.f32.gmra.mrb[2].mxu0 %v3792_v21 }
  0xab   : > { %3155 = vmatprep.mubr.f32.mxu0 %v3805_v32  ;;  %3468 = vmatpush3.bf16.msra.mxu0 %v3819_v41 }
  0xac   : > { %3470 = vmatprep.subr.bf16.mxu0 %v3842_v53 }
  0xae   : > { %3156 = vmatmul.mubr.f32.gmra.mrb[4].mxu0 %v3826_v44 }
  0xaf   : > { %3158 = vmatprep.mubr.f32.mxu0 %v3832_v47  ;;  %3472 = vmatpush3.bf16.msra.mxu0 %v3842_v53 }
  0xb0   : > { %3474 = vmatprep.subr.bf16.mxu0 %v3877_v3 }
  0xb2   : > { %3159 = vmatmul.mubr.f32.gmra.mrb[6].mxu0 %v3882_v5 }
  0xb3   : > { %3161 = vmatprep.mubr.f32.mxu0 %v3895_v17  ;;  %3476 = vmatpush3.bf16.msra.mxu0 %v3877_v3 }
  0xb6   : > { %3162 = vmatmul.mubr.f32.gmra.mrb[8].mxu0 %v3920_v61 }
  0xb7   : > { %3164 = vmatprep.mubr.f32.mxu0 %v3935_v4 }
  0xba   : > { %3165 = vmatmul.mubr.f32.gmra.mrb[10].mxu0 %v3957_v37 }
  0xbb   : > { %3167 = vmatprep.mubr.f32.mxu0 %v3968_v27 }
  0xbe   : > { %3168 = vmatmul.mubr.f32.gmra.mrb[12].mxu0 %v4001_v23 }
  0xbf   : > { %3170 = vmatprep.mubr.f32.mxu0 %v4005_v34 }
  0xc2   : > { %3171 = vmatmul.mubr.f32.gmra.mrb[14].mxu0 %v4018_v38 }
  0xc3   : > { %3189 = vmatprep.mubr.f32.mxu0 %v3764_v6  ;;  %v1460_v6 = vld [vmem:[%s4534_s2] sm:$0xff] }
  0xc6   : > { %3190 = vmatmul.mubr.f32.vlgmr.msra.gmra.mrb[0].mxu0 %v3767_v8  ;;  %v1461_v8 = vld [vmem:[%s4534_s2 + $0x8] sm:$0xff] }
  0xc7   : > { %3192 = vmatprep.mubr.f32.mxu0 %v3779_v13  ;;  %v1512_v13 = vand.u32 4294901760, %v1460_v6 }
  0xc9   : > { %v4203_v35 = vsub.f32 %v1460_v6, %v1512_v13 }
  0xca   : > { %3193 = vmatmul.mubr.f32.gmra.mrb[2].mxu0 %v3792_v21  ;;  %v1515_v21 = vand.u32 4294901760, %v1461_v8 }
  0xcb   : > { %3195 = vmatprep.mubr.f32.mxu0 %v3805_v32 }
  0xcc   : > { %v4199_v32 = vpack.c.bf16 %v1515_v21, %v1512_v13  ;;  %v4205_v41 = vsub.f32 %v1461_v8, %v1515_v21 }
  0xce   : > { %3196 = vmatmul.mubr.f32.gmra.mrb[4].mxu0 %v3826_v44  ;;  %3478 = vmatprep.subr.bf16.mxu1 %v4199_v32  ;;  %v1741_v44 = vand.u32 4294901760, %v4203_v35 }
  0xcf   : > { %3198 = vmatprep.mubr.f32.mxu0 %v3832_v47  ;;  %3480 = vmatpush3.bf16.msra.mxu1 %v4199_v32  ;;  %v1748_v47 = vand.u32 4294901760, %v4205_v41 }
  0xd0   : > { %v1742_v53 = vsub.f32 %v4203_v35, %v1741_v44 }
  0xd1   : > { %v1749_v54 = vsub.f32 %v4205_v41, %v1748_v47 }
  0xd2   : > { %3199 = vmatmul.mubr.f32.gmra.mrb[6].mxu0 %v3882_v5  ;;  %v1743_v58 = vand.u32 4294901760, %v1742_v53 }
  0xd3   : > { %3201 = vmatprep.mubr.f32.mxu0 %v3895_v17  ;;  %v1750_v3 = vand.u32 4294901760, %v1749_v54  ;;  %v4217_v17 = vpack.c.bf16 %v4205_v41, %v4203_v35 }
  0xd5   : > { %v3481_v5 = vpack.c.bf16 %v1750_v3, %v1743_v58 }
  0xd6   : > { %3202 = vmatmul.mubr.f32.gmra.mrb[8].mxu0 %v3920_v61 }
  0xd7   : > { %3204 = vmatprep.mubr.f32.mxu0 %v3935_v4  ;;  %3482 = vmatprep.subr.bf16.mxu1 %v3481_v5 }
  0xda   : > { %3205 = vmatmul.mubr.f32.gmra.mrb[10].mxu0 %v3957_v37 }
  0xdb   : > { %3207 = vmatprep.mubr.f32.mxu0 %v3968_v27 }
  0xde   : > { %3208 = vmatmul.mubr.f32.gmra.mrb[12].mxu0 %v4001_v23 }
  0xdf   : > { %3210 = vmatprep.mubr.f32.mxu0 %v4005_v34 }
  0xe2   : > { %3211 = vmatmul.mubr.f32.gmra.mrb[14].mxu0 %v4018_v38 }
 0x199   : > { %v3191_v29 = vpop.f32.mrb[0].mxu0 }
 0x19a   : > { %v1467_v61 = vsel %vm1462_vm1, %v3191_v29, 0  ;;  %v1366_v28 = vpop.f32.mrb[1].mxu0 }
 0x19b   : > { %v4220_v37 = vand.u32 4294901760, %v1467_v61  ;;  %v1464_v4 = vsel %vm1462_vm1, %v1366_v28, 0 }
 0x19c   : > { %v4223_v34 = vand.u32 4294901760, %v1464_v4 }
 0x19d   : > { %v4226_v57 = vsub.f32 %v1467_v61, %v4220_v37  ;;  %v3194_v27 = vpop.f32.mrb[2].mxu0 }
 0x19e   : > { %v4229_v22 = vsub.f32 %v1464_v4, %v4223_v34  ;;  %v1473_v40 = vsel %vm1462_vm1, %v3194_v27, 0  ;;  %v1378_v39 = vpop.f32.mrb[3].mxu0 }
 0x19f   : > { %v1590_v14 = vand.u32 4294901760, %v4226_v57  ;;  %v4233_v45 = vand.u32 4294901760, %v1473_v40  ;;  %v1470_v23 = vsel %vm1462_vm1, %v1378_v39, 0 }
 0x1a0   : > { %v4236_v18 = vand.u32 4294901760, %v1470_v23  ;;  %v1580_v38 = vand.u32 4294901760, %v4229_v22 }
 0x1a1   : > { %v4240_v55 = vsub.f32 %v1473_v40, %v4233_v45  ;;  %v3197_v49 = vpop.f32.mrb[4].mxu0  ;;  %v1591_v36 = vsub.f32 %v4226_v57, %v1590_v14 }
 0x1a2   : > { %v4246_v62 = vsub.f32 %v1470_v23, %v4236_v18  ;;  %v1479_v7 = vsel %vm1462_vm1, %v3197_v49, 0  ;;  %v1390_v12 = vpop.f32.mrb[5].mxu0  ;;  %v1581_v42 = vsub.f32 %v4229_v22, %v1580_v38 }
 0x1a3   : > { %v1610_v46 = vand.u32 4294901760, %v4240_v55  ;;  %v4253_v50 = vand.u32 4294901760, %v1479_v7  ;;  %v1476_v1 = vsel %vm1462_vm1, %v1390_v12, 0  ;;  %v1592_v11 = vand.u32 4294901760, %v1591_v36 }
 0x1a4   : > { %v1600_v63 = vand.u32 4294901760, %v4246_v62  ;;  %v4257_v19 = vand.u32 4294901760, %v1476_v1  ;;  %v1582_v2 = vand.u32 4294901760, %v1581_v42 }
 0x1a5   : > { %v4260_v15 = vsub.f32 %v1479_v7, %v4253_v50  ;;  %v3200_v24 = vpop.f32.mrb[6].mxu0  ;;  %v1611_v51 = vsub.f32 %v4240_v55, %v1610_v46 }
 0x1a6   : > { %v4266_v9 = vsub.f32 %v1476_v1, %v4257_v19  ;;  %v1485_v60 = vsel %vm1462_vm1, %v3200_v24, 0  ;;  %v1402_v25 = vpop.f32.mrb[7].mxu0  ;;  %3217 = vmatprep.mubr.f32.mxu1 %v1582_v2  ;;  %v1601_v26 = vsub.f32 %v4246_v62, %v1600_v63 }
 0x1a7   : > { %v1630_v52 = vand.u32 4294901760, %v4260_v15  ;;  %v4273_v56 = vand.u32 4294901760, %v1485_v60  ;;  %v1482_v30 = vsel %vm1462_vm1, %v1402_v25, 0  ;;  %3218 = vmatmul.mubr.f32.vlgmr.msra.gmra.mrb[0].mxu1 %v1592_v11  ;;  %v1612_v43 = vand.u32 4294901760, %v1611_v51 }
 0x1a8   : > { %v1620_v33 = vand.u32 4294901760, %v4266_v9  ;;  %v4277_v48 = vand.u32 4294901760, %v1482_v30  ;;  %3484 = vmatpush3.bf16.msra.mxu1 %v3481_v5  ;;  %v1602_v10 = vand.u32 4294901760, %v1601_v26 }
 0x1a9   : > { %v4280_v20 = vsub.f32 %v1485_v60, %v4273_v56  ;;  %v3203_v31 = vpop.f32.mrb[8].mxu0  ;;  %v1631_v59 = vsub.f32 %v4260_v15, %v1630_v52  ;;  %3486 = vmatprep.subr.bf16.mxu1 %v4217_v17 }
 0x1aa   : > { %v4287_v0 = vsub.f32 %v1482_v30, %v4277_v48  ;;  %v1491_v16 = vsel %vm1462_vm1, %v3203_v31, 0  ;;  %v1414_v6 = vpop.f32.mrb[9].mxu0  ;;  %3220 = vmatprep.mubr.f32.mxu1 %v1602_v10  ;;  %v1621_v8 = vsub.f32 %v4266_v9, %v1620_v33 }
 0x1ab   : > { %v1650_v13 = vand.u32 4294901760, %v4280_v20  ;;  %v4294_v21 = vand.u32 4294901760, %v1491_v16  ;;  %v1488_v53 = vsel %vm1462_vm1, %v1414_v6, 0  ;;  %3221 = vmatmul.mubr.f32.gmra.mrb[2].mxu1 %v1612_v43  ;;  %v1632_v61 = vand.u32 4294901760, %v1631_v59 }
 0x1ac   : > { %v1640_v54 = vand.u32 4294901760, %v4287_v0  ;;  %v4298_v58 = vand.u32 4294901760, %v1488_v53  ;;  %v1622_v3 = vand.u32 4294901760, %v1621_v8 }
 0x1ad   : > { %v4301_v5 = vsub.f32 %v1491_v16, %v4294_v21  ;;  %v3206_v29 = vpop.f32.mrb[10].mxu0  ;;  %v1651_v28 = vsub.f32 %v4280_v20, %v1650_v13 }
 0x1ae   : > { %v4307_v4 = vsub.f32 %v1488_v53, %v4298_v58  ;;  %v1497_v27 = vsel %vm1462_vm1, %v3206_v29, 0  ;;  %v1426_v40 = vpop.f32.mrb[11].mxu0  ;;  %3223 = vmatprep.mubr.f32.mxu1 %v1622_v3  ;;  %v1641_v39 = vsub.f32 %v4287_v0, %v1640_v54 }
 0x1af   : > { %v1670_v23 = vand.u32 4294901760, %v4301_v5  ;;  %v4314_v49 = vand.u32 4294901760, %v1497_v27  ;;  %v1494_v36 = vsel %vm1462_vm1, %v1426_v40, 0  ;;  %3224 = vmatmul.mubr.f32.gmra.mrb[4].mxu1 %v1632_v61  ;;  %v1652_v24 = vand.u32 4294901760, %v1651_v28 }
 0x1b0   : > { %v1660_v7 = vand.u32 4294901760, %v4307_v4  ;;  %v4318_v12 = vand.u32 4294901760, %v1494_v36  ;;  %v1642_v42 = vand.u32 4294901760, %v1641_v39 }
 0x1b1   : > { %v4321_v1 = vsub.f32 %v1497_v27, %v4314_v49  ;;  %v3209_v2 = vpop.f32.mrb[12].mxu0  ;;  %v1671_v11 = vsub.f32 %v4301_v5, %v1670_v23 }
 0x1b2   : > { %v4327_v51 = vsub.f32 %v1494_v36, %v4318_v12  ;;  %v1503_v60 = vsel %vm1462_vm1, %v3209_v2, 0  ;;  %v1438_v25 = vpop.f32.mrb[13].mxu0  ;;  %3226 = vmatprep.mubr.f32.mxu1 %v1642_v42  ;;  %v1661_v26 = vsub.f32 %v4307_v4, %v1660_v7 }
 0x1b3   : > { %v1690_v30 = vand.u32 4294901760, %v4321_v1  ;;  %v4334_v10 = vand.u32 4294901760, %v1503_v60  ;;  %v1500_v31 = vsel %vm1462_vm1, %v1438_v25, 0  ;;  %3227 = vmatmul.mubr.f32.gmra.mrb[6].mxu1 %v1652_v24  ;;  %v1672_v53 = vand.u32 4294901760, %v1671_v11 }
 0x1b4   : > { %v1680_v43 = vand.u32 4294901760, %v4327_v51  ;;  %v4338_v59 = vand.u32 4294901760, %v1500_v31  ;;  %v1662_v16 = vand.u32 4294901760, %v1661_v26 }
 0x1b5   : > { %v4341_v6 = vsub.f32 %v1503_v60, %v4334_v10  ;;  %v3212_v8 = vpop.f32.mrb[14].mxu0  ;;  %v1691_v3 = vsub.f32 %v4321_v1, %v1690_v30 }
 0x1b6   : > { %v4347_v29 = vsub.f32 %v1500_v31, %v4338_v59  ;;  %v1509_v61 = vsel %vm1462_vm1, %v3212_v8, 0  ;;  %v1450_v28 = vpop.f32.mrb[15].mxu0  ;;  %3229 = vmatprep.mubr.f32.mxu1 %v1662_v16  ;;  %v1681_v27 = vsub.f32 %v4327_v51, %v1680_v43 }
 0x1b7   : > { %v1710_v40 = vand.u32 4294901760, %v4341_v6  ;;  %v4354_v39 = vand.u32 4294901760, %v1509_v61  ;;  %v1506_v36 = vsel %vm1462_vm1, %v1450_v28, 0  ;;  %3230 = vmatmul.mubr.f32.gmra.mrb[8].mxu1 %v1672_v53  ;;  %v1692_v60 = vand.u32 4294901760, %v1691_v3 }
 0x1b8   : > { %v1700_v42 = vand.u32 4294901760, %v4347_v29  ;;  %v4358_v2 = vand.u32 4294901760, %v1506_v36  ;;  %v1682_v24 = vand.u32 4294901760, %v1681_v27 }
 0x1b9   : > { %v4361_v11 = vsub.f32 %v1509_v61, %v4354_v39  ;;  %v1711_v25 = vsub.f32 %v4341_v6, %v1710_v40 }
 0x1ba   : > { %v4367_v26 = vsub.f32 %v1506_v36, %v4358_v2  ;;  %3232 = vmatprep.mubr.f32.mxu1 %v1682_v24  ;;  %v1701_v31 = vsub.f32 %v4347_v29, %v1700_v42 }
 0x1bb   : > { %v1730_v16 = vand.u32 4294901760, %v4361_v11  ;;  %3233 = vmatmul.mubr.f32.gmra.mrb[10].mxu1 %v1692_v60  ;;  %v1712_v61 = vand.u32 4294901760, %v1711_v25 }
 0x1bc   : > { %v1720_v8 = vand.u32 4294901760, %v4367_v26  ;;  %v1702_v53 = vand.u32 4294901760, %v1701_v31 }
 0x1bd   : > { %v1731_v3 = vsub.f32 %v4361_v11, %v1730_v16 }
 0x1be   : > { %3235 = vmatprep.mubr.f32.mxu1 %v1702_v53  ;;  %v1721_v28 = vsub.f32 %v4367_v26, %v1720_v8 }
 0x1bf   : > { %3236 = vmatmul.mubr.f32.gmra.mrb[12].mxu1 %v1712_v61  ;;  %v1732_v36 = vand.u32 4294901760, %v1731_v3 }
 0x1c0   : > { %v1722_v27 = vand.u32 4294901760, %v1721_v28 }
 0x1c2   : > { %3238 = vmatprep.mubr.f32.mxu1 %v1722_v27 }
 0x1c3   : > { %3239 = vmatmul.mubr.f32.gmra.mrb[14].mxu1 %v1732_v36 }
 0x1c4   : > { %3245 = vmatprep.mubr.f32.mxu1 %v4223_v34 }
 0x1c7   : > { %3246 = vmatmul.mubr.f32.vlgmr.msra.gmra.mrb[0].mxu1 %v4220_v37 }
 0x1c8   : > { %3248 = vmatprep.mubr.f32.mxu1 %v4236_v18  ;;  %3488 = vmatpush3.bf16.msra.mxu1 %v4217_v17  ;;  %v3493_v17 = vpack.c.bf16 %v1748_v47, %v1741_v44 }
 0x1c9   : > { %3490 = vmatprep.subr.bf16.mxu1 %v4199_v32 }
 0x1cb   : > { %3249 = vmatmul.mubr.f32.gmra.mrb[2].mxu1 %v4233_v45 }
 0x1cc   : > { %3251 = vmatprep.mubr.f32.mxu1 %v4257_v19 }
 0x1cf   : > { %3252 = vmatmul.mubr.f32.gmra.mrb[4].mxu1 %v4253_v50 }
 0x1d0   : > { %3254 = vmatprep.mubr.f32.mxu1 %v4277_v48 }
 0x1d3   : > { %3255 = vmatmul.mubr.f32.gmra.mrb[6].mxu1 %v4273_v56 }
 0x1d4   : > { %3257 = vmatprep.mubr.f32.mxu1 %v4298_v58 }
 0x1d7   : > { %3258 = vmatmul.mubr.f32.gmra.mrb[8].mxu1 %v4294_v21 }
 0x1d8   : > { %3260 = vmatprep.mubr.f32.mxu1 %v4318_v12 }
 0x1db   : > { %3261 = vmatmul.mubr.f32.gmra.mrb[10].mxu1 %v4314_v49 }
 0x1dc   : > { %3263 = vmatprep.mubr.f32.mxu1 %v4338_v59 }
 0x1df   : > { %3264 = vmatmul.mubr.f32.gmra.mrb[12].mxu1 %v4334_v10 }
 0x1e0   : > { %3266 = vmatprep.mubr.f32.mxu1 %v4358_v2 }
 0x1e3   : > { %3267 = vmatmul.mubr.f32.gmra.mrb[14].mxu1 %v4354_v39 }
 0x1e4   : > { %3273 = vmatprep.mubr.f32.mxu1 %v4229_v22 }
 0x1e7   : > { %3274 = vmatmul.mubr.f32.vlgmr.msra.gmra.mrb[0].mxu1 %v4226_v57 }
 0x1e8   : > { %3276 = vmatprep.mubr.f32.mxu1 %v4246_v62  ;;  %3492 = vmatpush3.bf16.msra.mxu1 %v4199_v32 }
 0x1e9   : > { %3494 = vmatprep.subr.bf16.mxu1 %v3493_v17 }
 0x1eb   : > { %3277 = vmatmul.mubr.f32.gmra.mrb[2].mxu1 %v4240_v55 }
 0x1ec   : > { %3279 = vmatprep.mubr.f32.mxu1 %v4266_v9 }
 0x1ef   : > { %3280 = vmatmul.mubr.f32.gmra.mrb[4].mxu1 %v4260_v15 }
 0x1f0   : > { %3282 = vmatprep.mubr.f32.mxu1 %v4287_v0 }
 0x1f3   : > { %3283 = vmatmul.mubr.f32.gmra.mrb[6].mxu1 %v4280_v20 }
 0x1f4   : > { %3285 = vmatprep.mubr.f32.mxu1 %v4307_v4 }
 0x1f7   : > { %3286 = vmatmul.mubr.f32.gmra.mrb[8].mxu1 %v4301_v5 }
 0x1f8   : > { %3288 = vmatprep.mubr.f32.mxu1 %v4327_v51 }
 0x1fb   : > { %3289 = vmatmul.mubr.f32.gmra.mrb[10].mxu1 %v4321_v1 }
 0x1fc   : > { %3291 = vmatprep.mubr.f32.mxu1 %v4347_v29 }
 0x1ff   : > { %3292 = vmatmul.mubr.f32.gmra.mrb[12].mxu1 %v4341_v6 }
 0x200   : > { %3294 = vmatprep.mubr.f32.mxu1 %v4367_v26 }
 0x203   : > { %3295 = vmatmul.mubr.f32.gmra.mrb[14].mxu1 %v4361_v11 }
 0x204   : > { %3301 = vmatprep.mubr.f32.mxu1 %v1580_v38 }
 0x207   : > { %3302 = vmatmul.mubr.f32.vlgmr.msra.gmra.mrb[0].mxu1 %v1590_v14 }
 0x208   : > { %3304 = vmatprep.mubr.f32.mxu1 %v1600_v63  ;;  %3496 = vmatpush3.bf16.msra.mxu1 %v3493_v17 }
 0x209   : > { %3498 = vmatprep.subr.bf16.mxu1 %v4199_v32 }
 0x20b   : > { %3305 = vmatmul.mubr.f32.gmra.mrb[2].mxu1 %v1610_v46 }
 0x20c   : > { %3307 = vmatprep.mubr.f32.mxu1 %v1620_v33 }
 0x20f   : > { %3308 = vmatmul.mubr.f32.gmra.mrb[4].mxu1 %v1630_v52 }
 0x210   : > { %3310 = vmatprep.mubr.f32.mxu1 %v1640_v54 }
 0x213   : > { %3311 = vmatmul.mubr.f32.gmra.mrb[6].mxu1 %v1650_v13 }
 0x214   : > { %3313 = vmatprep.mubr.f32.mxu1 %v1660_v7 }
 0x217   : > { %3314 = vmatmul.mubr.f32.gmra.mrb[8].mxu1 %v1670_v23 }
 0x218   : > { %3316 = vmatprep.mubr.f32.mxu1 %v1680_v43 }
 0x21b   : > { %3317 = vmatmul.mubr.f32.gmra.mrb[10].mxu1 %v1690_v30 }
 0x21c   : > { %3319 = vmatprep.mubr.f32.mxu1 %v1700_v42 }
 0x21f   : > { %3320 = vmatmul.mubr.f32.gmra.mrb[12].mxu1 %v1710_v40 }
 0x220   : > { %3322 = vmatprep.mubr.f32.mxu1 %v1720_v8 }
 0x223   : > { %3323 = vmatmul.mubr.f32.gmra.mrb[14].mxu1 %v1730_v16 }
 0x224   : > { %3329 = vmatprep.mubr.f32.mxu1 %v4223_v34 }
 0x227   : > { %3330 = vmatmul.mubr.f32.vlgmr.msra.gmra.mrb[0].mxu1 %v4220_v37 }
 0x228   : > { %3332 = vmatprep.mubr.f32.mxu1 %v4236_v18  ;;  %3500 = vmatpush3.bf16.msra.mxu1 %v4199_v32 }
 0x22b   : > { %3333 = vmatmul.mubr.f32.gmra.mrb[2].mxu1 %v4233_v45 }
 0x22c   : > { %3335 = vmatprep.mubr.f32.mxu1 %v4257_v19 }
 0x22f   : > { %3336 = vmatmul.mubr.f32.gmra.mrb[4].mxu1 %v4253_v50 }
 0x230   : > { %3338 = vmatprep.mubr.f32.mxu1 %v4277_v48 }
 0x233   : > { %3339 = vmatmul.mubr.f32.gmra.mrb[6].mxu1 %v4273_v56 }
 0x234   : > { %3341 = vmatprep.mubr.f32.mxu1 %v4298_v58 }
 0x237   : > { %3342 = vmatmul.mubr.f32.gmra.mrb[8].mxu1 %v4294_v21 }
 0x238   : > { %3344 = vmatprep.mubr.f32.mxu1 %v4318_v12 }
 0x23b   : > { %3345 = vmatmul.mubr.f32.gmra.mrb[10].mxu1 %v4314_v49 }
 0x23c   : > { %3347 = vmatprep.mubr.f32.mxu1 %v4338_v59 }
 0x23f   : > { %3348 = vmatmul.mubr.f32.gmra.mrb[12].mxu1 %v4334_v10 }
 0x240   : > { %3350 = vmatprep.mubr.f32.mxu1 %v4358_v2 }
 0x243   : > { %3351 = vmatmul.mubr.f32.gmra.mrb[14].mxu1 %v4354_v39 }
 0x244   : > { %3357 = vmatprep.mubr.f32.mxu1 %v4223_v34 }
 0x247   : > { %3358 = vmatmul.mubr.f32.vlgmr.msra.gmra.mrb[0].mxu1 %v4220_v37 }
 0x248   : > { %3360 = vmatprep.mubr.f32.mxu1 %v4236_v18 }
 0x24b   : > { %3361 = vmatmul.mubr.f32.gmra.mrb[2].mxu1 %v4233_v45 }
 0x24c   : > { %3363 = vmatprep.mubr.f32.mxu1 %v4257_v19 }
 0x24f   : > { %3364 = vmatmul.mubr.f32.gmra.mrb[4].mxu1 %v4253_v50 }
 0x250   : > { %3366 = vmatprep.mubr.f32.mxu1 %v4277_v48 }
 0x253   : > { %3367 = vmatmul.mubr.f32.gmra.mrb[6].mxu1 %v4273_v56 }
 0x254   : > { %3369 = vmatprep.mubr.f32.mxu1 %v4298_v58 }
 0x257   : > { %3370 = vmatmul.mubr.f32.gmra.mrb[8].mxu1 %v4294_v21 }
 0x258   : > { %3372 = vmatprep.mubr.f32.mxu1 %v4318_v12 }
 0x25b   : > { %3373 = vmatmul.mubr.f32.gmra.mrb[10].mxu1 %v4314_v49 }
 0x25c   : > { %3375 = vmatprep.mubr.f32.mxu1 %v4338_v59 }
 0x25f   : > { %3376 = vmatmul.mubr.f32.gmra.mrb[12].mxu1 %v4334_v10 }
 0x260   : > { %3378 = vmatprep.mubr.f32.mxu1 %v4358_v2 }
 0x263   : > { %3379 = vmatmul.mubr.f32.gmra.mrb[14].mxu1 %v4354_v39 }
 0x31a   : > { %v3359_v32 = vpop.f32.mrb[0].mxu1 }
 0x31b   : > { %2617 = vst.msk [vmem:[%s4489_s11 + $0x8] sm:$0xff] %vm2615_vm2, %v3359_v32  ;;  %v2521_v35 = vpop.f32.mrb[1].mxu1 }
 0x31c   : > { %2616 = vst.msk [vmem:[%s4489_s11] sm:$0xff] %vm2615_vm2, %v2521_v35 }
 0x31e   : > { %v3362_v41 = vpop.f32.mrb[2].mxu1 }
 0x31f   : > { %2619 = vst.msk [vmem:[%s4489_s11 + $0x18] sm:$0xff] %vm2615_vm2, %v3362_v41  ;;  %v2533_v44 = vpop.f32.mrb[3].mxu1 }
 0x320   : > { %2618 = vst.msk [vmem:[%s4489_s11 + $0x10] sm:$0xff] %vm2615_vm2, %v2533_v44 }
 0x322   : > { %v3365_v47 = vpop.f32.mrb[4].mxu1 }
 0x323   : > { %2621 = vst.msk [vmem:[%s4489_s11 + $0x28] sm:$0xff] %vm2615_vm2, %v3365_v47  ;;  %v2545_v37 = vpop.f32.mrb[5].mxu1 }
 0x324   : > { %2620 = vst.msk [vmem:[%s4489_s11 + $0x20] sm:$0xff] %vm2615_vm2, %v2545_v37 }
 0x326   : > { %v3368_v34 = vpop.f32.mrb[6].mxu1 }
 0x327   : > { %2623 = vst.msk [vmem:[%s4489_s11 + $0x38] sm:$0xff] %vm2615_vm2, %v3368_v34  ;;  %v2557_v57 = vpop.f32.mrb[7].mxu1 }
 0x328   : > { %2622 = vst.msk [vmem:[%s4489_s11 + $0x30] sm:$0xff] %vm2615_vm2, %v2557_v57 }
 0x32a   : > { %v3371_v22 = vpop.f32.mrb[8].mxu1 }
 0x32b   : > { %2625 = vst.msk [vmem:[%s4489_s11 + $0x48] sm:$0xff] %vm2615_vm2, %v3371_v22  ;;  %v2569_v14 = vpop.f32.mrb[9].mxu1 }
 0x32c   : > { %2624 = vst.msk [vmem:[%s4489_s11 + $0x40] sm:$0xff] %vm2615_vm2, %v2569_v14 }
 0x32e   : > { %v3374_v45 = vpop.f32.mrb[10].mxu1 }
 0x32f   : > { %2627 = vst.msk [vmem:[%s4489_s11 + $0x58] sm:$0xff] %vm2615_vm2, %v3374_v45  ;;  %v2581_v18 = vpop.f32.mrb[11].mxu1 }
 0x330   : > { %2626 = vst.msk [vmem:[%s4489_s11 + $0x50] sm:$0xff] %vm2615_vm2, %v2581_v18 }
 0x332   : > { %v3377_v38 = vpop.f32.mrb[12].mxu1 }
 0x333   : > { %2629 = vst.msk [vmem:[%s4489_s11 + $0x68] sm:$0xff] %vm2615_vm2, %v3377_v38  ;;  %v2593_v55 = vpop.f32.mrb[13].mxu1 }
 0x334   : > { %2628 = vst.msk [vmem:[%s4489_s11 + $0x60] sm:$0xff] %vm2615_vm2, %v2593_v55 }
 0x336   : > { %v3380_v62 = vpop.f32.mrb[14].mxu1 }
 0x337   : > { %2631 = vst.msk [vmem:[%s4489_s11 + $0x78] sm:$0xff] %vm2615_vm2, %v3380_v62  ;;  %v2605_v46 = vpop.f32.mrb[15].mxu1 }
 0x338   : > { %2630 = vst.msk [vmem:[%s4489_s11 + $0x70] sm:$0xff] %vm2615_vm2, %v2605_v46 }
 0x339 PF: > { %s13_s14 = sadd.s32 1, %s3707_s14   ;;  %s4570_s12 = smov %s3703_s13 }
 0x33a   : > { %p10_p6 = scmp.ge.s32.totalorder %s13_s14, 4   ;;  %s4571_s13 = smov %s4573_s15 }
 0x33c   :  { %12 = sbr.rel (!%p10_p6) target bundleno = 2 (0x2), region = 62 }

</bundles_post_ra>
